<compile_context>
chip_gen: v7x
topology: tpu7x:2x2x1
jax: 0.10.0
libtpu: 0.0.40
codegen_flags: <defaults>
</compile_context>

<pallas_src>
import jax
import jax.numpy as jnp
from jax.experimental import pallas as pl
from jax.experimental.pallas import tpu as pltpu

K_IN = 28 * 28       # 784 (784 % 8 == 0, so it is a legal full-extent block dim)
HID = 512
OUT = 10
OUT_PAD = 128        # lane-dense output width (unmasked vst); sliced to 10 in the wrapper
MAX_TILE_B = 1024    # upper bound on the batch tile


def mlp_kernel(x_ref, w1_ref, b1_ref, w2_ref, b2_ref, w3_ref, b3_ref, o_ref):
    # Cast activations to bf16 inside the kernel (cheaper than a wrapper-side cast pass).
    x = x_ref[...].astype(jnp.bfloat16)
    # Linear(784, 512) + ReLU   (bf16 MXU inputs, f32 accumulate, bias/ReLU in f32)
    h1 = jnp.dot(x, w1_ref[...], preferred_element_type=jnp.float32)
    h1 = jnp.maximum(h1 + b1_ref[...], 0.0).astype(jnp.bfloat16)
    # TODO(synk): Dropout(0.25) is identity at inference; training-mode dropout would need
    #             pltpu.prng_seed / pltpu.prng_random_bits and is omitted here.
    # Linear(512, 512) + ReLU
    h2 = jnp.dot(h1, w2_ref[...], preferred_element_type=jnp.float32)
    h2 = jnp.maximum(h2 + b2_ref[...], 0.0).astype(jnp.bfloat16)
    # Linear(512, 10) + ReLU  (output padded to 128 lanes; extra lanes are zero)
    h3 = jnp.dot(h2, w3_ref[...], preferred_element_type=jnp.float32)
    o_ref[...] = jnp.maximum(h3 + b3_ref[...], 0.0).astype(o_ref.dtype)


def init_params(key):
    """Deterministic init mimicking nn.Linear's uniform(-1/sqrt(fan_in), 1/sqrt(fan_in))."""
    dims = [(K_IN, HID), (HID, HID), (HID, OUT)]
    params = []
    keys = jax.random.split(key, 2 * len(dims))
    for i, (fan_in, fan_out) in enumerate(dims):
        bound = 1.0 / jnp.sqrt(jnp.float32(fan_in))
        w = jax.random.uniform(keys[2 * i], (fan_in, fan_out), jnp.float32, -bound, bound)
        b = jax.random.uniform(keys[2 * i + 1], (1, fan_out), jnp.float32, -bound, bound)
        params += [w, b]
    return tuple(params)


def prepare_params(params):
    """One-time prep: cast weights to bf16; pad only the last layer's output 10 -> 128."""
    w1, b1, w2, b2, w3, b3 = params
    w1p = w1.astype(jnp.bfloat16)                                          # (784, 512)
    w2p = w2.astype(jnp.bfloat16)                                          # (512, 512)
    w3p = jnp.zeros((HID, OUT_PAD), jnp.float32).at[:, :OUT].set(w3).astype(jnp.bfloat16)
    b3p = jnp.zeros((1, OUT_PAD), jnp.float32).at[:, :OUT].set(b3)
    # biases stay f32 (added after the f32 accumulation)
    return (w1p, b1.astype(jnp.float32), w2p, b2.astype(jnp.float32), w3p, b3p)


def _round_up(x, m):
    return ((x + m - 1) // m) * m


def _pick_tiling(B, max_tile_b=MAX_TILE_B):
    """Batch tile + grid length. Keeps >= 2 grid steps when possible (v7x megacore),
    fills the 256-row MXU on large batches, and shrinks for tiny batches."""
    if B < 16:
        tile_b = _round_up(max(B, 1), 8)
        n_tiles = 1
    else:
        n_tiles = max(2, pl.cdiv(B, max_tile_b))
        tile_b = _round_up(pl.cdiv(B, n_tiles), 8)
        n_tiles = pl.cdiv(B, tile_b)
    return tile_b, n_tiles


def neural_network_forward(x_nchw, prepared_params, max_tile_b=MAX_TILE_B):
    """Pallas forward pass of the PyTorch NeuralNetwork module (eval mode)."""
    w1, b1, w2, b2, w3, b3 = prepared_params
    B = x_nchw.shape[0]
    # nn.Flatten: free, contiguous reshape; stays f32 (bf16 cast happens in-kernel).
    x_flat = x_nchw.reshape(B, K_IN).astype(jnp.float32)

    tile_b, n_tiles = _pick_tiling(B, max_tile_b)
    Bp = tile_b * n_tiles
    if Bp != B:
        # Only a handful of rows; padded rows produce ReLU(bias) and are sliced off below.
        x_flat = jnp.pad(x_flat, ((0, Bp - B), (0, 0)))

    out = pl.pallas_call(
        mlp_kernel,
        out_shape=jax.ShapeDtypeStruct((Bp, OUT_PAD), jnp.bfloat16),
        grid=(n_tiles,),
        in_specs=[
            pl.BlockSpec((tile_b, K_IN), lambda i: (i, 0)),      # x tile, streamed (784 = full dim)
            pl.BlockSpec((K_IN, HID), lambda i: (0, 0)),         # weights: constant index -> resident
            pl.BlockSpec((1, HID), lambda i: (0, 0)),
            pl.BlockSpec((HID, HID), lambda i: (0, 0)),
            pl.BlockSpec((1, HID), lambda i: (0, 0)),
            pl.BlockSpec((HID, OUT_PAD), lambda i: (0, 0)),
            pl.BlockSpec((1, OUT_PAD), lambda i: (0, 0)),
        ],
        out_specs=pl.BlockSpec((tile_b, OUT_PAD), lambda i: (i, 0)),
        compiler_params=pltpu.CompilerParams(
            dimension_semantics=("parallel",),                    # 2-TC sharding on v7x
        ),
    )(x_flat, w1, b1, w2, b2, w3, b3)
    return out[:B, :OUT].astype(jnp.float32)


def _reference_forward(x_nchw, params):
    """Pure-JAX f32 reference (eval mode: dropout = identity)."""
    w1, b1, w2, b2, w3, b3 = params
    x = x_nchw.reshape(x_nchw.shape[0], K_IN).astype(jnp.float32)
    h1 = jnp.maximum(x @ w1 + b1, 0.0)
    h2 = jnp.maximum(h1 @ w2 + b2, 0.0)
    return jnp.maximum(h2 @ w3 + b3, 0.0)


if __name__ == "__main__":
    key = jax.random.PRNGKey(0)
    k_x, k_p = jax.random.split(key)

    # FashionMNIST-shaped input: (batch, channels, H, W) = (8, 1, 28, 28), NCHW like PyTorch.
    x = jax.random.normal(k_x, (8, 1, 28, 28), dtype=jnp.float32)
    params = init_params(k_p)
    prepared = prepare_params(params)

    logits = neural_network_forward(x, prepared)
    jax.block_until_ready(logits)

    assert logits.shape == (8, 10)
    assert bool(jnp.all(logits >= 0.0))  # final ReLU (present in the reference module)

    # Correctness vs. f32 reference (bf16 MXU inputs / bf16 output -> allow a few % tolerance).
    ref = _reference_forward(x, params)
    assert bool(jnp.all(jnp.abs(logits - ref) <= 0.05 + 0.05 * jnp.abs(ref)))

    print("KERNEL_OK")
</pallas_src>

<mosaic_0001>
module attributes {stable_mosaic.version = 11 : i64} {
  func.func @mlp_kernel(%arg0: i32, %arg1: memref<8x784xf32, #tpu.memory_space<vmem>>, %arg2: memref<784x512xbf16, #tpu.memory_space<vmem>>, %arg3: memref<1x512xf32, #tpu.memory_space<vmem>>, %arg4: memref<512x512xbf16, #tpu.memory_space<vmem>>, %arg5: memref<1x512xf32, #tpu.memory_space<vmem>>, %arg6: memref<512x128xbf16, #tpu.memory_space<vmem>>, %arg7: memref<1x128xf32, #tpu.memory_space<vmem>>, %arg8: memref<8x128xbf16, #tpu.memory_space<vmem>>) attributes {dimension_semantics = [#tpu.dimension_semantics<parallel>], iteration_bounds = array<i64: 1>, scalar_prefetch = 0 : i64, scratch_operands = 0 : i64, tpu.core_type = #tpu.core_type<tc>, window_params = [{transform_indices = @transform_0, window_bounds = array<i64: 8, 784>}, {pipeline_mode = #tpu.pipeline_mode<synchronous>, transform_indices = @transform_1, window_bounds = array<i64: 784, 512>}, {pipeline_mode = #tpu.pipeline_mode<synchronous>, transform_indices = @transform_2, window_bounds = array<i64: 1, 512>}, {pipeline_mode = #tpu.pipeline_mode<synchronous>, transform_indices = @transform_3, window_bounds = array<i64: 512, 512>}, {pipeline_mode = #tpu.pipeline_mode<synchronous>, transform_indices = @transform_4, window_bounds = array<i64: 1, 512>}, {pipeline_mode = #tpu.pipeline_mode<synchronous>, transform_indices = @transform_5, window_bounds = array<i64: 512, 128>}, {pipeline_mode = #tpu.pipeline_mode<synchronous>, transform_indices = @transform_6, window_bounds = array<i64: 1, 128>}, {transform_indices = @transform_7, window_bounds = array<i64: 8, 128>}]} {
    %c0 = arith.constant 0 : index
    %c0_0 = arith.constant 0 : index
    %0 = vector.load %arg1[%c0, %c0_0] : memref<8x784xf32, #tpu.memory_space<vmem>>, vector<8x784xf32>
    %1 = arith.truncf %0 : vector<8x784xf32> to vector<8x784xbf16>
    %c0_1 = arith.constant 0 : index
    %c0_2 = arith.constant 0 : index
    %2 = vector.load %arg2[%c0_1, %c0_2] : memref<784x512xbf16, #tpu.memory_space<vmem>>, vector<784x512xbf16>
    %cst = arith.constant dense<0.000000e+00> : vector<8x512xf32>
    %3 = tpu.matmul %1, %2, %cst {dimension_numbers = #tpu.dot_dimension_numbers<[1], [0], [0], [1], [0, 0, 1, 1], [], []>} : vector<8x784xbf16>, vector<784x512xbf16>, vector<8x512xf32> -> vector<8x512xf32>
    %c0_3 = arith.constant 0 : index
    %c0_4 = arith.constant 0 : index
    %4 = vector.load %arg3[%c0_3, %c0_4] : memref<1x512xf32, #tpu.memory_space<vmem>>, vector<1x512xf32>
    %5 = vector.broadcast %4 : vector<1x512xf32> to vector<8x512xf32>
    %6 = arith.addf %3, %5 : vector<8x512xf32>
    %cst_5 = arith.constant 0.000000e+00 : f32
    %7 = vector.broadcast %cst_5 : f32 to vector<8x512xf32>
    %8 = arith.maximumf %6, %7 : vector<8x512xf32>
    %9 = arith.truncf %8 : vector<8x512xf32> to vector<8x512xbf16>
    %c0_6 = arith.constant 0 : index
    %c0_7 = arith.constant 0 : index
    %10 = vector.load %arg4[%c0_6, %c0_7] : memref<512x512xbf16, #tpu.memory_space<vmem>>, vector<512x512xbf16>
    %cst_8 = arith.constant dense<0.000000e+00> : vector<8x512xf32>
    %11 = tpu.matmul %9, %10, %cst_8 {dimension_numbers = #tpu.dot_dimension_numbers<[1], [0], [0], [1], [0, 0, 1, 1], [], []>} : vector<8x512xbf16>, vector<512x512xbf16>, vector<8x512xf32> -> vector<8x512xf32>
    %c0_9 = arith.constant 0 : index
    %c0_10 = arith.constant 0 : index
    %12 = vector.load %arg5[%c0_9, %c0_10] : memref<1x512xf32, #tpu.memory_space<vmem>>, vector<1x512xf32>
    %13 = vector.broadcast %12 : vector<1x512xf32> to vector<8x512xf32>
    %14 = arith.addf %11, %13 : vector<8x512xf32>
    %cst_11 = arith.constant 0.000000e+00 : f32
    %15 = vector.broadcast %cst_11 : f32 to vector<8x512xf32>
    %16 = arith.maximumf %14, %15 : vector<8x512xf32>
    %17 = arith.truncf %16 : vector<8x512xf32> to vector<8x512xbf16>
    %c0_12 = arith.constant 0 : index
    %c0_13 = arith.constant 0 : index
    %18 = vector.load %arg6[%c0_12, %c0_13] : memref<512x128xbf16, #tpu.memory_space<vmem>>, vector<512x128xbf16>
    %cst_14 = arith.constant dense<0.000000e+00> : vector<8x128xf32>
    %19 = tpu.matmul %17, %18, %cst_14 {dimension_numbers = #tpu.dot_dimension_numbers<[1], [0], [0], [1], [0, 0, 1, 1], [], []>} : vector<8x512xbf16>, vector<512x128xbf16>, vector<8x128xf32> -> vector<8x128xf32>
    %c0_15 = arith.constant 0 : index
    %c0_16 = arith.constant 0 : index
    %20 = vector.load %arg7[%c0_15, %c0_16] : memref<1x128xf32, #tpu.memory_space<vmem>>, vector<1x128xf32>
    %21 = vector.broadcast %20 : vector<1x128xf32> to vector<8x128xf32>
    %22 = arith.addf %19, %21 : vector<8x128xf32>
    %cst_17 = arith.constant 0.000000e+00 : f32
    %23 = vector.broadcast %cst_17 : f32 to vector<8x128xf32>
    %24 = arith.maximumf %22, %23 : vector<8x128xf32>
    %25 = arith.truncf %24 : vector<8x128xf32> to vector<8x128xbf16>
    %c0_18 = arith.constant 0 : index
    %c0_19 = arith.constant 0 : index
    %26 = vector.load %arg8[%c0_18, %c0_19] : memref<8x128xbf16, #tpu.memory_space<vmem>>, vector<8x128xbf16>
    tpu.vector_store %arg8[%c0_18, %c0_19], %25 {strides = array<i32>} : memref<8x128xbf16, #tpu.memory_space<vmem>>, vector<8x128xbf16>,
    return
  }
  func.func @transform_0(%arg0: i32) -> (i32, i32) {
    %c0_i32 = arith.constant 0 : i32
    %c0_i32_0 = arith.constant 0 : i32
    return %arg0, %c0_i32 : i32, i32
  }
  func.func @transform_1(%arg0: i32) -> (i32, i32) {
    %c0_i32 = arith.constant 0 : i32
    %c0_i32_0 = arith.constant 0 : i32
    %c0_i32_1 = arith.constant 0 : i32
    return %c0_i32, %c0_i32_0 : i32, i32
  }
  func.func @transform_2(%arg0: i32) -> (i32, i32) {
    %c0_i32 = arith.constant 0 : i32
    %c0_i32_0 = arith.constant 0 : i32
    %c0_i32_1 = arith.constant 0 : i32
    return %c0_i32, %c0_i32_0 : i32, i32
  }
  func.func @transform_3(%arg0: i32) -> (i32, i32) {
    %c0_i32 = arith.constant 0 : i32
    %c0_i32_0 = arith.constant 0 : i32
    %c0_i32_1 = arith.constant 0 : i32
    return %c0_i32, %c0_i32_0 : i32, i32
  }
  func.func @transform_4(%arg0: i32) -> (i32, i32) {
    %c0_i32 = arith.constant 0 : i32
    %c0_i32_0 = arith.constant 0 : i32
    %c0_i32_1 = arith.constant 0 : i32
    return %c0_i32, %c0_i32_0 : i32, i32
  }
  func.func @transform_5(%arg0: i32) -> (i32, i32) {
    %c0_i32 = arith.constant 0 : i32
    %c0_i32_0 = arith.constant 0 : i32
    %c0_i32_1 = arith.constant 0 : i32
    return %c0_i32, %c0_i32_0 : i32, i32
  }
  func.func @transform_6(%arg0: i32) -> (i32, i32) {
    %c0_i32 = arith.constant 0 : i32
    %c0_i32_0 = arith.constant 0 : i32
    %c0_i32_1 = arith.constant 0 : i32
    return %c0_i32, %c0_i32_0 : i32, i32
  }
  func.func @transform_7(%arg0: i32) -> (i32, i32) {
    %c0_i32 = arith.constant 0 : i32
    %c0_i32_0 = arith.constant 0 : i32
    return %arg0, %c0_i32 : i32, i32
  }
}

</mosaic_0001>

<bundles_post_ra>
// kernel: tpu_custom_call.1
= control target key start
LH: loop header
LB: loop body
LE: loop exit
PB: predicated region body
PF: predicated region fallthrough
CT: control target
= control target key end

     0   :  { %12 = vsyncpa [#allocation3], 0  ;;  %s4203_s0 = inlined_call_operand.hbm [shape: f32[8,784], index: 0, kind: input, shape index: {}]   ;;  %s4204_s1 = inlined_call_operand.hbm [shape: bf16[784,512], index: 1, kind: input, shape index: {}]   ;;  %s4205_s2 = inlined_call_operand.vmem [shape: f32[1,512], index: 2, kind: input, shape index: {}]   ;;  %s4206_s3 = inlined_call_operand.hbm [shape: bf16[512,512], index: 3, kind: input, shape index: {}]   ;;  %s4207_s4 = inlined_call_operand.vmem [shape: f32[1,512], index: 4, kind: input, shape index: {}]   ;;  %s4208_s5 = inlined_call_operand.hbm [shape: bf16[512,128], index: 5, kind: input, shape index: {}]   ;;  %s4209_s6 = inlined_call_operand.vmem [shape: f32[1,128], index: 6, kind: input, shape index: {}]   ;;  %s4210_s7 = inlined_call_operand.hbm [shape: bf16[8,128], index: 7, kind: output, shape index: {}]  }
   0x1   :  { %13 = vsyncpa [#allocation6], 0 }
   0x2   :  { %14 = vsyncpa [#allocation9], 0 }
   0x3   :  { %15 = vsyncpa [#allocation4], 0  ;;  %s4047_s24 = smov [#allocation5]   ;;  %s3929_s28 = scalar_lea.hbm %s4204_s1, 25088 }
   0x4   :  { %s31_s25 = sshll.u32 %s4047_s24, 4  ;;  %p3930_p0 = scmp.ne.s32.totalorder %s4204_s1, %s3929_s28  ;;  %s32_s25 = int_to_ptr.vmem [resolvable:$true] %s31_s25 }
   0x5   :  { %p3933_p1 = scmp.lt.u32.totalorder %s3929_s28, %s4204_s1 }
   0x7   :  { %p3935_p2 = pnand %p3933_p1, %p3930_p0 }
   0x9   :  { %3938 = shalt.err (!%p3935_p2)
}
   0xa   :  { %s3939_s10 = scalar_lea.vmem %s32_s25, 25088  ;;  %p3944_p4 = scmp.lt.s32.totalorder %s32_s25, %s32_s25 }
   0xb   :  { %p3940_p3 = scmp.ne.s32.totalorder %s32_s25, %s3939_s10  ;;  %p3945_p5 = scmp.lt.s32.totalorder %s3939_s10, %s3939_s10 }
   0xd   :  { %p3946_p6 = por %p3945_p5, %p3944_p4 }
   0xf   :  { %p3947_p7 = pnand %p3946_p6, %p3940_p3 }
  0x11   :  { %3950 = shalt.err (!%p3947_p7)
}
  0x12   :  { %s4048_s11 = smov 256   ;;  %s4049_s12 = smov 16  }
  0x13   :  { %37 = dma.hbm_to_vmem [thread:$0]  %s4204_s1, 25088, %s32_s25, [#allocation6], %s4048_s11, %s4048_s11, %s4049_s12  }
  0x14   :  { %s4050_s15 = smov [#allocation2]   ;;  %s4051_s17 = smov [#allocation7]  }
  0x15   :  { %s22_s16 = sshll.u32 %s4050_s15, 4  ;;  %s45_s18 = sshll.u32 %s4051_s17, 4  ;;  %s23_s16 = int_to_ptr.vmem [resolvable:$true] %s22_s16  ;;  %s46_s18 = int_to_ptr.vmem [resolvable:$true] %s45_s18 }
  0x16   :  { %s3951_s21 = scalar_lea.hbm %s4203_s0, 896 }
  0x17   :  { %p3952_p8 = scmp.ne.s32.totalorder %s4203_s0, %s3951_s21  ;;  %p3955_p9 = scmp.lt.u32.totalorder %s3951_s21, %s4203_s0 }
  0x19   :  { %p3957_p10 = pnand %p3955_p9, %p3952_p8 }
  0x1b   :  { %3960 = shalt.err (!%p3957_p10)
}
  0x1c   :  { %s3961_s1 = scalar_lea.vmem %s23_s16, 896  ;;  %p3966_p12 = scmp.lt.s32.totalorder %s23_s16, %s23_s16 }
  0x1d   :  { %p3962_p11 = scmp.ne.s32.totalorder %s23_s16, %s3961_s1  ;;  %p3967_p13 = scmp.lt.s32.totalorder %s3961_s1, %s3961_s1 }
  0x1f   :  { %p3968_p0 = por %p3967_p13, %p3966_p12 }
  0x21   :  { %p3969_p1 = pnand %p3968_p0, %p3962_p11 }
  0x23   :  { %3972 = shalt.err (!%p3969_p1)
}
  0x24   :  { %25 = dma.hbm_to_vmem [thread:$0]  %s4203_s0, 896, %s23_s16, [#allocation3]  }
  0x25   :  { %s3973_s30 = scalar_lea.hbm %s4206_s3, 16384 }
  0x26   :  { %p3974_p2 = scmp.ne.s32.totalorder %s4206_s3, %s3973_s30  ;;  %p3977_p3 = scmp.lt.u32.totalorder %s3973_s30, %s4206_s3 }
  0x28   :  { %p3979_p4 = pnand %p3977_p3, %p3974_p2 }
  0x2a   :  { %3982 = shalt.err (!%p3979_p4)
}
  0x2b   :  { %s3983_s14 = scalar_lea.vmem %s46_s18, 16384  ;;  %p3988_p6 = scmp.lt.s32.totalorder %s46_s18, %s46_s18 }
  0x2c   :  { %p3984_p5 = scmp.ne.s32.totalorder %s46_s18, %s3983_s14  ;;  %p3989_p7 = scmp.lt.s32.totalorder %s3983_s14, %s3983_s14 }
  0x2e   :  { %p3990_p8 = por %p3989_p7, %p3988_p6 }
  0x30   :  { %p3991_p9 = pnand %p3990_p8, %p3984_p5 }
  0x32   :  { %3994 = shalt.err (!%p3991_p9)
}
  0x33   :  { %51 = dma.hbm_to_vmem [thread:$0]  %s4206_s3, 16384, %s46_s18, [#allocation6], %s4048_s11, %s4048_s11, %s4049_s12  }
  0x34   :  { %s4052_s16 = smov [#allocation8]   ;;  %s3995_s21 = scalar_lea.hbm %s4208_s5, 4096 }
  0x35   :  { %s59_s17 = sshll.u32 %s4052_s16, 4  ;;  %p3996_p10 = scmp.ne.s32.totalorder %s4208_s5, %s3995_s21  ;;  %s60_s17 = int_to_ptr.vmem [resolvable:$true] %s59_s17 }
  0x36   :  { %p3999_p11 = scmp.lt.u32.totalorder %s3995_s21, %s4208_s5 }
  0x38   :  { %p4001_p12 = pnand %p3999_p11, %p3996_p10 }
  0x3a   :  { %4004 = shalt.err (!%p4001_p12)
}
  0x3b   :  { %s4005_s1 = scalar_lea.vmem %s60_s17, 4096  ;;  %p4010_p0 = scmp.lt.s32.totalorder %s60_s17, %s60_s17 }
  0x3c   :  { %p4006_p13 = scmp.ne.s32.totalorder %s60_s17, %s4005_s1  ;;  %p4011_p1 = scmp.lt.s32.totalorder %s4005_s1, %s4005_s1 }
  0x3e   :  { %p4012_p2 = por %p4011_p1, %p4010_p0 }
  0x40   :  { %p4013_p3 = pnand %p4012_p2, %p4006_p13 }
  0x42   :  { %4016 = shalt.err (!%p4013_p3)
}
  0x43   :  { %s4053_s3 = smov 64   ;;  %s4054_s11 = smov 4  }
  0x44   :  { %65 = dma.hbm_to_vmem [thread:$0]  %s4208_s5, 4096, %s60_s17, [#allocation9], %s4053_s3, %s4053_s3, %s4054_s11  }
  0x45   :  { %4039 = dma.done.wait [#allocation3], 896  }
  0x46   :  { %4040 = vsyncadd [#allocation3], 4294966400 }
  0x47   :  { %4041 = dma.done.wait [#allocation6], 41472  }
  0x48   :  { %4042 = vsyncadd [#allocation6], 4294925824 }
  0x49   :  { %4043 = dma.done.wait [#allocation9], 4096  }
  0x4a   :  { %4044 = vsyncadd [#allocation9], 4294963200  ;;  %v3411_v0 = vld [vmem:[#allocation5 + $0x4] ss:$16 sps:$4 sm:$0xff]   ;;  %v3413_v1 = vld [vmem:[#allocation5 + $0xc] ss:$16 sps:$4 sm:$0xff]  }
  0x4b   :  { %1297 = vmatprep.subr.bf16.mxu0 %v3411_v0  ;;  %v3415_v2 = vld [vmem:[#allocation5] ss:$16 sps:$4 sm:$0xff]   ;;  %v3416_v3 = vld [vmem:[#allocation5 + $0x8] ss:$16 sps:$4 sm:$0xff]   ;;  %1461 = vmatprep.subr.bf16.mxu1 %v3413_v1  ;;  %v3417_v4 = vld [vmem:[#allocation5 + $0x24] ss:$16 sps:$4 sm:$0xff]  }
  0x4c   :  { %1298 = vmatpush1.bf16.msra.mxu0 %v3415_v2  ;;  %1462 = vmatpush1.bf16.msra.mxu1 %v3416_v3  ;;  %v3419_v5 = vld [vmem:[#allocation5 + $0x2c] ss:$16 sps:$4 sm:$0xff]   ;;  %v3421_v6 = vld [vmem:[#allocation5 + $0x20] ss:$16 sps:$4 sm:$0xff]   ;;  %v3422_v7 = vld [vmem:[#allocation5 + $0x28] ss:$16 sps:$4 sm:$0xff]  }
  0x4d   :  { %1299 = vmatprep.subr.bf16.mxu0 %v3417_v4  ;;  %1463 = vmatprep.subr.bf16.mxu1 %v3419_v5  ;;  %v3423_v8 = vld [vmem:[#allocation5 + $0x44] ss:$16 sps:$4 sm:$0xff]   ;;  %v3425_v9 = vld [vmem:[#allocation5 + $0x4c] ss:$16 sps:$4 sm:$0xff]   ;;  %v3427_v10 = vld [vmem:[#allocation5 + $0x40] ss:$16 sps:$4 sm:$0xff]  }
  0x4e   :  { %v3428_v11 = vld [vmem:[#allocation5 + $0x48] ss:$16 sps:$4 sm:$0xff]   ;;  %v3429_v12 = vld [vmem:[#allocation5 + $0x64] ss:$16 sps:$4 sm:$0xff]   ;;  %v3431_v13 = vld [vmem:[#allocation5 + $0x6c] ss:$16 sps:$4 sm:$0xff]  }
  0x4f   :  { %v3433_v14 = vld [vmem:[#allocation5 + $0x60] ss:$16 sps:$4 sm:$0xff]   ;;  %v3434_v15 = vld [vmem:[#allocation5 + $0x68] ss:$16 sps:$4 sm:$0xff]   ;;  %v3435_v16 = vld [vmem:[#allocation5 + $0x84] ss:$16 sps:$4 sm:$0xff]  }
  0x50   :  { %1300 = vmatpush1.bf16.msra.mxu0 %v3421_v6  ;;  %1464 = vmatpush1.bf16.msra.mxu1 %v3422_v7  ;;  %v3437_v17 = vld [vmem:[#allocation5 + $0x8c] ss:$16 sps:$4 sm:$0xff]   ;;  %v3439_v18 = vld [vmem:[#allocation5 + $0x80] ss:$16 sps:$4 sm:$0xff]   ;;  %v3440_v19 = vld [vmem:[#allocation5 + $0x88] ss:$16 sps:$4 sm:$0xff]  }
  0x51   :  { %1301 = vmatprep.subr.bf16.mxu0 %v3423_v8  ;;  %1465 = vmatprep.subr.bf16.mxu1 %v3425_v9  ;;  %v3441_v20 = vld [vmem:[#allocation5 + $0xa4] ss:$16 sps:$4 sm:$0xff]   ;;  %v3443_v21 = vld [vmem:[#allocation5 + $0xac] ss:$16 sps:$4 sm:$0xff]   ;;  %v3445_v22 = vld [vmem:[#allocation5 + $0xa0] ss:$16 sps:$4 sm:$0xff]  }
  0x52   :  { %v3446_v23 = vld [vmem:[#allocation5 + $0xa8] ss:$16 sps:$4 sm:$0xff]   ;;  %v3447_v24 = vld [vmem:[#allocation5 + $0xc4] ss:$16 sps:$4 sm:$0xff]   ;;  %v3449_v25 = vld [vmem:[#allocation5 + $0xcc] ss:$16 sps:$4 sm:$0xff]  }
  0x53   :  { %v3451_v26 = vld [vmem:[#allocation5 + $0xc0] ss:$16 sps:$4 sm:$0xff]   ;;  %v3452_v27 = vld [vmem:[#allocation5 + $0xc8] ss:$16 sps:$4 sm:$0xff]   ;;  %v3453_v28 = vld [vmem:[#allocation5 + $0xe4] ss:$16 sps:$4 sm:$0xff]  }
  0x54   :  { %1302 = vmatpush1.bf16.msra.mxu0 %v3427_v10  ;;  %1466 = vmatpush1.bf16.msra.mxu1 %v3428_v11  ;;  %v3455_v29 = vld [vmem:[#allocation5 + $0xec] ss:$16 sps:$4 sm:$0xff]   ;;  %v3457_v30 = vld [vmem:[#allocation5 + $0xe0] ss:$16 sps:$4 sm:$0xff]   ;;  %v3458_v31 = vld [vmem:[#allocation5 + $0xe8] ss:$16 sps:$4 sm:$0xff]  }
  0x55   :  { %1303 = vmatprep.subr.bf16.mxu0 %v3429_v12  ;;  %1467 = vmatprep.subr.bf16.mxu1 %v3431_v13  ;;  %v3459_v32 = vld [vmem:[#allocation5 + $0x104] ss:$16 sps:$4 sm:$0xff]   ;;  %v3461_v33 = vld [vmem:[#allocation5 + $0x10c] ss:$16 sps:$4 sm:$0xff]   ;;  %v3463_v34 = vld [vmem:[#allocation5 + $0x100] ss:$16 sps:$4 sm:$0xff]  }
  0x56   :  { %v3464_v35 = vld [vmem:[#allocation5 + $0x108] ss:$16 sps:$4 sm:$0xff]   ;;  %v3465_v36 = vld [vmem:[#allocation5 + $0x124] ss:$16 sps:$4 sm:$0xff]   ;;  %v3467_v37 = vld [vmem:[#allocation5 + $0x12c] ss:$16 sps:$4 sm:$0xff]  }
  0x57   :  { %v3469_v38 = vld [vmem:[#allocation5 + $0x120] ss:$16 sps:$4 sm:$0xff]   ;;  %v3470_v39 = vld [vmem:[#allocation5 + $0x128] ss:$16 sps:$4 sm:$0xff]   ;;  %v3471_v40 = vld [vmem:[#allocation5 + $0x144] ss:$16 sps:$4 sm:$0xff]  }
  0x58   :  { %1304 = vmatpush1.bf16.msra.mxu0 %v3433_v14  ;;  %1468 = vmatpush1.bf16.msra.mxu1 %v3434_v15  ;;  %v3473_v41 = vld [vmem:[#allocation5 + $0x14c] ss:$16 sps:$4 sm:$0xff]   ;;  %v3475_v42 = vld [vmem:[#allocation5 + $0x140] ss:$16 sps:$4 sm:$0xff]   ;;  %v3476_v43 = vld [vmem:[#allocation5 + $0x148] ss:$16 sps:$4 sm:$0xff]  }
  0x59   :  { %1305 = vmatprep.subr.bf16.mxu0 %v3435_v16  ;;  %1469 = vmatprep.subr.bf16.mxu1 %v3437_v17  ;;  %v3477_v44 = vld [vmem:[#allocation5 + $0x164] ss:$16 sps:$4 sm:$0xff]   ;;  %v3479_v45 = vld [vmem:[#allocation5 + $0x16c] ss:$16 sps:$4 sm:$0xff]   ;;  %v3481_v47 = vld [vmem:[#allocation5 + $0x160] ss:$16 sps:$4 sm:$0xff]  }
  0x5a   :  { %v82_v46 = vld [vmem:[#allocation2 + $0x8] sm:$0xff]  ;;  %v3482_v49 = vld [vmem:[#allocation5 + $0x168] ss:$16 sps:$4 sm:$0xff]   ;;  %v3485_v51 = vld [vmem:[#allocation5 + $0x18c] ss:$16 sps:$4 sm:$0xff]   ;;  %vm1293_vm0 = vcmask 130048  }
  0x5b   :  { %v89_v48 = vpack.c.bf16 %v82_v46, %v82_v46  ;;  %v3483_v50 = vld [vmem:[#allocation5 + $0x184] ss:$16 sps:$4 sm:$0xff]   ;;  %v3487_v52 = vld [vmem:[#allocation5 + $0x180] ss:$16 sps:$4 sm:$0xff]   ;;  %v3488_v53 = vld [vmem:[#allocation5 + $0x188] ss:$16 sps:$4 sm:$0xff]  }
  0x5c   :  { %1306 = vmatpush1.bf16.msra.mxu0 %v3439_v18  ;;  %1470 = vmatpush1.bf16.msra.mxu1 %v3440_v19  ;;  %v3489_v54 = vld [vmem:[#allocation5 + $0x1a4] ss:$16 sps:$4 sm:$0xff]   ;;  %v3491_v55 = vld [vmem:[#allocation5 + $0x1ac] ss:$16 sps:$4 sm:$0xff]   ;;  %v3493_v56 = vld [vmem:[#allocation5 + $0x1a0] ss:$16 sps:$4 sm:$0xff]  }
  0x5d   :  { %1307 = vmatprep.subr.bf16.mxu0 %v3441_v20  ;;  %1471 = vmatprep.subr.bf16.mxu1 %v3443_v21  ;;  %v3494_v57 = vld [vmem:[#allocation5 + $0x1a8] ss:$16 sps:$4 sm:$0xff]   ;;  %v3495_v58 = vld [vmem:[#allocation5 + $0x1c4] ss:$16 sps:$4 sm:$0xff]   ;;  %v3497_v59 = vld [vmem:[#allocation5 + $0x1cc] ss:$16 sps:$4 sm:$0xff]  }
  0x5e   :  { %1329 = vmatprep.mubr.bf16.mxu0 %v89_v48  ;;  %1493 = vmatprep.mubr.bf16.mxu1 %v89_v48  ;;  %v3499_v60 = vld [vmem:[#allocation5 + $0x1c0] ss:$16 sps:$4 sm:$0xff]   ;;  %v3500_v61 = vld [vmem:[#allocation5 + $0x1c8] ss:$16 sps:$4 sm:$0xff]   ;;  %v3501_v62 = vld [vmem:[#allocation5 + $0x1e4] ss:$16 sps:$4 sm:$0xff]  }
  0x5f   :  { %v3503_v63 = vld [vmem:[#allocation5 + $0x1ec] ss:$16 sps:$4 sm:$0xff]   ;;  %v3505_v0 = vld [vmem:[#allocation5 + $0x1e0] ss:$16 sps:$4 sm:$0xff]   ;;  %v3506_v1 = vld [vmem:[#allocation5 + $0x1e8] ss:$16 sps:$4 sm:$0xff]  }
  0x60   :  { %1308 = vmatpush1.bf16.msra.mxu0 %v3445_v22  ;;  %1472 = vmatpush1.bf16.msra.mxu1 %v3446_v23  ;;  %v81_v2 = vld [vmem:[#allocation2] sm:$0xff]  ;;  %v3509_v3 = vld [vmem:[#allocation5 + $0x204] ss:$16 sps:$4 sm:$0xff]   ;;  %v3507_v6 = vld [vmem:[#allocation5 + $0x200] ss:$16 sps:$4 sm:$0xff]   ;;  %s4056_s29 = smov [#allocation10]  }
  0x61   :  { %1309 = vmatprep.subr.bf16.mxu0 %v3447_v24  ;;  %1473 = vmatprep.subr.bf16.mxu1 %v3449_v25  ;;  %v3512_v4 = vld [vmem:[#allocation5 + $0x20c] ss:$16 sps:$4 sm:$0xff]   ;;  %v88_v5 = vpack.c.bf16 %v81_v2, %v81_v2  ;;  %v3510_v7 = vld [vmem:[#allocation5 + $0x208] ss:$16 sps:$4 sm:$0xff]   ;;  %v3515_v8 = vld [vmem:[#allocation5 + $0x224] ss:$16 sps:$4 sm:$0xff]  }
  0x62   :  { %v3518_v9 = vld [vmem:[#allocation5 + $0x22c] ss:$16 sps:$4 sm:$0xff]   ;;  %v3513_v10 = vld [vmem:[#allocation5 + $0x220] ss:$16 sps:$4 sm:$0xff]   ;;  %v3516_v11 = vld [vmem:[#allocation5 + $0x228] ss:$16 sps:$4 sm:$0xff]  }
  0x63   :  { %v3521_v12 = vld [vmem:[#allocation5 + $0x244] ss:$16 sps:$4 sm:$0xff]   ;;  %v3524_v13 = vld [vmem:[#allocation5 + $0x24c] ss:$16 sps:$4 sm:$0xff]   ;;  %v3519_v14 = vld [vmem:[#allocation5 + $0x240] ss:$16 sps:$4 sm:$0xff]  }
  0x64   :  { %1310 = vmatpush1.bf16.msra.mxu0 %v3451_v26  ;;  %1474 = vmatpush1.bf16.msra.mxu1 %v3452_v27  ;;  %v3522_v15 = vld [vmem:[#allocation5 + $0x248] ss:$16 sps:$4 sm:$0xff]   ;;  %v3527_v16 = vld [vmem:[#allocation5 + $0x264] ss:$16 sps:$4 sm:$0xff]   ;;  %v3530_v17 = vld [vmem:[#allocation5 + $0x26c] ss:$16 sps:$4 sm:$0xff]  }
  0x65   :  { %1311 = vmatprep.subr.bf16.mxu0 %v3453_v28  ;;  %1475 = vmatprep.subr.bf16.mxu1 %v3455_v29  ;;  %v3525_v18 = vld [vmem:[#allocation5 + $0x260] ss:$16 sps:$4 sm:$0xff]   ;;  %v3528_v19 = vld [vmem:[#allocation5 + $0x268] ss:$16 sps:$4 sm:$0xff]   ;;  %v3533_v20 = vld [vmem:[#allocation5 + $0x284] ss:$16 sps:$4 sm:$0xff]  }
  0x66   :  { %v3536_v21 = vld [vmem:[#allocation5 + $0x28c] ss:$16 sps:$4 sm:$0xff]   ;;  %v3531_v22 = vld [vmem:[#allocation5 + $0x280] ss:$16 sps:$4 sm:$0xff]   ;;  %v3534_v23 = vld [vmem:[#allocation5 + $0x288] ss:$16 sps:$4 sm:$0xff]  }
  0x67   :  { %v3539_v24 = vld [vmem:[#allocation5 + $0x2a4] ss:$16 sps:$4 sm:$0xff]   ;;  %v3542_v25 = vld [vmem:[#allocation5 + $0x2ac] ss:$16 sps:$4 sm:$0xff]   ;;  %v3537_v26 = vld [vmem:[#allocation5 + $0x2a0] ss:$16 sps:$4 sm:$0xff]  }
  0x68   :  { %1312 = vmatpush1.bf16.msra.mxu0 %v3457_v30  ;;  %1476 = vmatpush1.bf16.msra.mxu1 %v3458_v31  ;;  %v3540_v27 = vld [vmem:[#allocation5 + $0x2a8] ss:$16 sps:$4 sm:$0xff]   ;;  %v3545_v28 = vld [vmem:[#allocation5 + $0x2c4] ss:$16 sps:$4 sm:$0xff]   ;;  %v3548_v29 = vld [vmem:[#allocation5 + $0x2cc] ss:$16 sps:$4 sm:$0xff]  }
  0x69   :  { %1313 = vmatprep.subr.bf16.mxu0 %v3459_v32  ;;  %1477 = vmatprep.subr.bf16.mxu1 %v3461_v33  ;;  %v84_v30 = vld [vmem:[#allocation2 + $0x18] sm:$0xff]  ;;  %v3546_v33 = vld [vmem:[#allocation5 + $0x2c8] ss:$16 sps:$4 sm:$0xff]   ;;  %s2947_s30 = sshll.u32 %s4056_s29, 4  ;;  %s2948_s30 = int_to_ptr.vmem [resolvable:$true] %s2947_s30 }
  0x6a   :  { %v3543_v31 = vld [vmem:[#allocation5 + $0x2c0] ss:$16 sps:$4 sm:$0xff]   ;;  %v91_v32 = vpack.c.bf16 %v84_v30, %v84_v30  ;;  %v3569_v46 = vld [vmem:[#allocation5 + $0x344] ss:$16 sps:$4 sm:$0xff]   ;;  %s4017_s8 = scalar_lea.vmem %s2948_s30, 64  ;;  %p4022_p5 = scmp.lt.s32.totalorder %s2948_s30, %s2948_s30 }
  0x6b   :  { %v3567_v48 = vld [vmem:[#allocation5 + $0x340] ss:$16 sps:$4 sm:$0xff]   ;;  %v3599_v2 = vld [vmem:[#allocation5 + $0x3e4] ss:$16 sps:$4 sm:$0xff]   ;;  %p4018_p4 = scmp.ne.s32.totalorder %s2948_s30, %s4017_s8  ;;  %p4023_p6 = scmp.lt.s32.totalorder %s4017_s8, %s4017_s8 }
  0x6c   :  { %1314 = vmatpush1.bf16.msra.mxu0 %v3463_v34  ;;  %1478 = vmatpush1.bf16.msra.mxu1 %v3464_v35  ;;  %v3551_v34 = vld [vmem:[#allocation5 + $0x2e4] ss:$16 sps:$4 sm:$0xff]   ;;  %v3554_v35 = vld [vmem:[#allocation5 + $0x2ec] ss:$16 sps:$4 sm:$0xff]  }
  0x6d   :  { %1315 = vmatprep.subr.bf16.mxu0 %v3465_v36  ;;  %1479 = vmatprep.subr.bf16.mxu1 %v3467_v37  ;;  %v3549_v36 = vld [vmem:[#allocation5 + $0x2e0] ss:$16 sps:$4 sm:$0xff]   ;;  %v3552_v37 = vld [vmem:[#allocation5 + $0x2e8] ss:$16 sps:$4 sm:$0xff]   ;;  %v3635_v30 = vld [vmem:[#allocation5 + $0x4a4] ss:$16 sps:$4 sm:$0xff]   ;;  %p4024_p7 = por %p4023_p6, %p4022_p5 }
  0x6f   :  { %p4025_p8 = pnand %p4024_p7, %p4018_p4 }
  0x70   :  { %1316 = vmatpush1.bf16.msra.mxu0 %v3469_v38  ;;  %1480 = vmatpush1.bf16.msra.mxu1 %v3470_v39  ;;  %v3557_v38 = vld [vmem:[#allocation5 + $0x304] ss:$16 sps:$4 sm:$0xff]   ;;  %v3560_v39 = vld [vmem:[#allocation5 + $0x30c] ss:$16 sps:$4 sm:$0xff]  }
  0x71   :  { %1317 = vmatprep.subr.bf16.mxu0 %v3471_v40  ;;  %1481 = vmatprep.subr.bf16.mxu1 %v3473_v41  ;;  %v3555_v40 = vld [vmem:[#allocation5 + $0x300] ss:$16 sps:$4 sm:$0xff]   ;;  %v3558_v41 = vld [vmem:[#allocation5 + $0x308] ss:$16 sps:$4 sm:$0xff]  }
  0x74   :  { %1318 = vmatpush1.bf16.msra.mxu0 %v3475_v42  ;;  %1482 = vmatpush1.bf16.msra.mxu1 %v3476_v43  ;;  %v3563_v42 = vld [vmem:[#allocation5 + $0x324] ss:$16 sps:$4 sm:$0xff]   ;;  %v3566_v43 = vld [vmem:[#allocation5 + $0x32c] ss:$16 sps:$4 sm:$0xff]  }
  0x75   :  { %1319 = vmatprep.subr.bf16.mxu0 %v3477_v44  ;;  %1483 = vmatprep.subr.bf16.mxu1 %v3479_v45  ;;  %v3561_v44 = vld [vmem:[#allocation5 + $0x320] ss:$16 sps:$4 sm:$0xff]   ;;  %v3564_v45 = vld [vmem:[#allocation5 + $0x328] ss:$16 sps:$4 sm:$0xff]  }
  0x78   :  { %1320 = vmatpush1.bf16.msra.mxu0 %v3481_v47  ;;  %1484 = vmatpush1.bf16.msra.mxu1 %v3482_v49  ;;  %v3572_v47 = vld [vmem:[#allocation5 + $0x34c] ss:$16 sps:$4 sm:$0xff]   ;;  %v3570_v49 = vld [vmem:[#allocation5 + $0x348] ss:$16 sps:$4 sm:$0xff]  }
  0x79   :  { %1321 = vmatprep.subr.bf16.mxu0 %v3483_v50  ;;  %1485 = vmatprep.subr.bf16.mxu1 %v3485_v51  ;;  %v3575_v50 = vld [vmem:[#allocation5 + $0x364] ss:$16 sps:$4 sm:$0xff]   ;;  %v3578_v51 = vld [vmem:[#allocation5 + $0x36c] ss:$16 sps:$4 sm:$0xff]  }
  0x7c   :  { %1322 = vmatpush1.bf16.msra.mxu0 %v3487_v52  ;;  %1486 = vmatpush1.bf16.msra.mxu1 %v3488_v53  ;;  %v3573_v52 = vld [vmem:[#allocation5 + $0x360] ss:$16 sps:$4 sm:$0xff]   ;;  %v3576_v53 = vld [vmem:[#allocation5 + $0x368] ss:$16 sps:$4 sm:$0xff]  }
  0x7d   :  { %1323 = vmatprep.subr.bf16.mxu0 %v3489_v54  ;;  %1487 = vmatprep.subr.bf16.mxu1 %v3491_v55  ;;  %v3581_v54 = vld [vmem:[#allocation5 + $0x384] ss:$16 sps:$4 sm:$0xff]   ;;  %v3584_v55 = vld [vmem:[#allocation5 + $0x38c] ss:$16 sps:$4 sm:$0xff]  }
  0x80   :  { %1324 = vmatpush1.bf16.msra.mxu0 %v3493_v56  ;;  %1488 = vmatpush1.bf16.msra.mxu1 %v3494_v57  ;;  %v3579_v56 = vld [vmem:[#allocation5 + $0x380] ss:$16 sps:$4 sm:$0xff]   ;;  %v3582_v57 = vld [vmem:[#allocation5 + $0x388] ss:$16 sps:$4 sm:$0xff]  }
  0x81   :  { %1325 = vmatprep.subr.bf16.mxu0 %v3495_v58  ;;  %1489 = vmatprep.subr.bf16.mxu1 %v3497_v59  ;;  %v3587_v58 = vld [vmem:[#allocation5 + $0x3a4] ss:$16 sps:$4 sm:$0xff]   ;;  %v3590_v59 = vld [vmem:[#allocation5 + $0x3ac] ss:$16 sps:$4 sm:$0xff]  }
  0x84   :  { %1326 = vmatpush1.bf16.msra.mxu0 %v3499_v60  ;;  %1490 = vmatpush1.bf16.msra.mxu1 %v3500_v61  ;;  %v3585_v60 = vld [vmem:[#allocation5 + $0x3a0] ss:$16 sps:$4 sm:$0xff]   ;;  %v3588_v61 = vld [vmem:[#allocation5 + $0x3a8] ss:$16 sps:$4 sm:$0xff]  }
  0x85   :  { %1327 = vmatprep.subr.bf16.mxu0 %v3501_v62  ;;  %1491 = vmatprep.subr.bf16.mxu1 %v3503_v63  ;;  %v3593_v62 = vld [vmem:[#allocation5 + $0x3c4] ss:$16 sps:$4 sm:$0xff]   ;;  %v3596_v63 = vld [vmem:[#allocation5 + $0x3cc] ss:$16 sps:$4 sm:$0xff]  }
  0x88   :  { %1328 = vmatpush1.bf16.msra.mxu0 %v3505_v0  ;;  %1492 = vmatpush1.bf16.msra.mxu1 %v3506_v1  ;;  %v3591_v0 = vld [vmem:[#allocation5 + $0x3c0] ss:$16 sps:$4 sm:$0xff]   ;;  %v3594_v1 = vld [vmem:[#allocation5 + $0x3c8] ss:$16 sps:$4 sm:$0xff]  }
  0x89   :  { %1338 = vmatprep.subr.bf16.mxu0 %v3509_v3  ;;  %1502 = vmatprep.subr.bf16.mxu1 %v3512_v4  ;;  %v3602_v3 = vld [vmem:[#allocation5 + $0x3ec] ss:$16 sps:$4 sm:$0xff]   ;;  %v3597_v4 = vld [vmem:[#allocation5 + $0x3e0] ss:$16 sps:$4 sm:$0xff]  }
  0x8b   :  { %1330 = vmatmul.mubr.bf16.vlgmr.msra.gmra.mrb[0].mxu0 %v88_v5  ;;  %1494 = vmatmul.mubr.bf16.vlgmr.msra.gmra.mrb[0].mxu1 %v88_v5  ;;  %v3600_v5 = vld [vmem:[#allocation5 + $0x3e8] ss:$16 sps:$4 sm:$0xff]  }
  0x8c   :  { %1339 = vmatpush1.bf16.msra.mxu0 %v3507_v6  ;;  %1503 = vmatpush1.bf16.msra.mxu1 %v3510_v7  ;;  %v3605_v6 = vld [vmem:[#allocation5 + $0x404] ss:$16 sps:$4 sm:$0xff]   ;;  %v83_v7 = vld [vmem:[#allocation2 + $0x10] sm:$0xff] }
  0x8d   :  { %1340 = vmatprep.subr.bf16.mxu0 %v3515_v8  ;;  %1504 = vmatprep.subr.bf16.mxu1 %v3518_v9  ;;  %v3608_v8 = vld [vmem:[#allocation5 + $0x40c] ss:$16 sps:$4 sm:$0xff]   ;;  %v3603_v9 = vld [vmem:[#allocation5 + $0x400] ss:$16 sps:$4 sm:$0xff]  }
  0x8e   :  { %1370 = vmatprep.mubr.bf16.mxu0 %v91_v32  ;;  %1534 = vmatprep.mubr.bf16.mxu1 %v91_v32  ;;  %v3633_v32 = vld [vmem:[#allocation5 + $0x4a0] ss:$16 sps:$4 sm:$0xff]  }
  0x90   :  { %1341 = vmatpush1.bf16.msra.mxu0 %v3513_v10  ;;  %1505 = vmatpush1.bf16.msra.mxu1 %v3516_v11  ;;  %v90_v10 = vpack.c.bf16 %v83_v7, %v83_v7  ;;  %v3606_v11 = vld [vmem:[#allocation5 + $0x408] ss:$16 sps:$4 sm:$0xff]   ;;  %v3698_v7 = vld [vmem:[#allocation5 + $0x5ec] ss:$16 sps:$4 sm:$0xff]  }
  0x91   :  { %1342 = vmatprep.subr.bf16.mxu0 %v3521_v12  ;;  %1506 = vmatprep.subr.bf16.mxu1 %v3524_v13  ;;  %v3611_v12 = vld [vmem:[#allocation5 + $0x424] ss:$16 sps:$4 sm:$0xff]   ;;  %v3614_v13 = vld [vmem:[#allocation5 + $0x42c] ss:$16 sps:$4 sm:$0xff]  }
  0x94   :  { %1343 = vmatpush1.bf16.msra.mxu0 %v3519_v14  ;;  %1507 = vmatpush1.bf16.msra.mxu1 %v3522_v15  ;;  %v86_v14 = vld [vmem:[#allocation2 + $0x28] sm:$0xff] }
  0x95   :  { %1344 = vmatprep.subr.bf16.mxu0 %v3527_v16  ;;  %1508 = vmatprep.subr.bf16.mxu1 %v3530_v17  ;;  %v93_v15 = vpack.c.bf16 %v86_v14, %v86_v14  ;;  %v3609_v16 = vld [vmem:[#allocation5 + $0x420] ss:$16 sps:$4 sm:$0xff]   ;;  %v3612_v17 = vld [vmem:[#allocation5 + $0x428] ss:$16 sps:$4 sm:$0xff]  }
  0x96   :  { %v3702_v14 = vld [vmem:[#allocation5 + $0x608] ss:$16 sps:$4 sm:$0xff]  }
  0x98   :  { %1345 = vmatpush1.bf16.msra.mxu0 %v3525_v18  ;;  %1509 = vmatpush1.bf16.msra.mxu1 %v3528_v19  ;;  %v3617_v18 = vld [vmem:[#allocation5 + $0x444] ss:$16 sps:$4 sm:$0xff]   ;;  %v3620_v19 = vld [vmem:[#allocation5 + $0x44c] ss:$16 sps:$4 sm:$0xff]  }
  0x99   :  { %1346 = vmatprep.subr.bf16.mxu0 %v3533_v20  ;;  %1510 = vmatprep.subr.bf16.mxu1 %v3536_v21  ;;  %v3615_v20 = vld [vmem:[#allocation5 + $0x440] ss:$16 sps:$4 sm:$0xff]   ;;  %v3618_v21 = vld [vmem:[#allocation5 + $0x448] ss:$16 sps:$4 sm:$0xff]  }
  0x9c   :  { %1347 = vmatpush1.bf16.msra.mxu0 %v3531_v22  ;;  %1511 = vmatpush1.bf16.msra.mxu1 %v3534_v23  ;;  %v3623_v22 = vld [vmem:[#allocation5 + $0x464] ss:$16 sps:$4 sm:$0xff]   ;;  %v3626_v23 = vld [vmem:[#allocation5 + $0x46c] ss:$16 sps:$4 sm:$0xff]  }
  0x9d   :  { %1348 = vmatprep.subr.bf16.mxu0 %v3539_v24  ;;  %1512 = vmatprep.subr.bf16.mxu1 %v3542_v25  ;;  %v3621_v24 = vld [vmem:[#allocation5 + $0x460] ss:$16 sps:$4 sm:$0xff]   ;;  %v3624_v25 = vld [vmem:[#allocation5 + $0x468] ss:$16 sps:$4 sm:$0xff]  }
  0xa0   :  { %1349 = vmatpush1.bf16.msra.mxu0 %v3537_v26  ;;  %1513 = vmatpush1.bf16.msra.mxu1 %v3540_v27  ;;  %v3629_v26 = vld [vmem:[#allocation5 + $0x484] ss:$16 sps:$4 sm:$0xff]   ;;  %v3632_v27 = vld [vmem:[#allocation5 + $0x48c] ss:$16 sps:$4 sm:$0xff]  }
  0xa1   :  { %1350 = vmatprep.subr.bf16.mxu0 %v3545_v28  ;;  %1514 = vmatprep.subr.bf16.mxu1 %v3548_v29  ;;  %v3627_v28 = vld [vmem:[#allocation5 + $0x480] ss:$16 sps:$4 sm:$0xff]   ;;  %v3630_v29 = vld [vmem:[#allocation5 + $0x488] ss:$16 sps:$4 sm:$0xff]  }
  0xa4   :  { %1351 = vmatpush1.bf16.msra.mxu0 %v3543_v31  ;;  %1515 = vmatpush1.bf16.msra.mxu1 %v3546_v33  ;;  %v3638_v31 = vld [vmem:[#allocation5 + $0x4ac] ss:$16 sps:$4 sm:$0xff]   ;;  %v3636_v33 = vld [vmem:[#allocation5 + $0x4a8] ss:$16 sps:$4 sm:$0xff]  }
  0xa5   :  { %1352 = vmatprep.subr.bf16.mxu0 %v3551_v34  ;;  %1516 = vmatprep.subr.bf16.mxu1 %v3554_v35  ;;  %v3641_v34 = vld [vmem:[#allocation5 + $0x4c4] ss:$16 sps:$4 sm:$0xff]   ;;  %v3644_v35 = vld [vmem:[#allocation5 + $0x4cc] ss:$16 sps:$4 sm:$0xff]  }
  0xa8   :  { %1353 = vmatpush1.bf16.msra.mxu0 %v3549_v36  ;;  %1517 = vmatpush1.bf16.msra.mxu1 %v3552_v37  ;;  %v3639_v36 = vld [vmem:[#allocation5 + $0x4c0] ss:$16 sps:$4 sm:$0xff]   ;;  %v3642_v37 = vld [vmem:[#allocation5 + $0x4c8] ss:$16 sps:$4 sm:$0xff]  }
  0xa9   :  { %1354 = vmatprep.subr.bf16.mxu0 %v3557_v38  ;;  %1518 = vmatprep.subr.bf16.mxu1 %v3560_v39  ;;  %v3647_v38 = vld [vmem:[#allocation5 + $0x4e4] ss:$16 sps:$4 sm:$0xff]   ;;  %v3650_v39 = vld [vmem:[#allocation5 + $0x4ec] ss:$16 sps:$4 sm:$0xff]  }
  0xac   :  { %1355 = vmatpush1.bf16.msra.mxu0 %v3555_v40  ;;  %1519 = vmatpush1.bf16.msra.mxu1 %v3558_v41  ;;  %v3645_v40 = vld [vmem:[#allocation5 + $0x4e0] ss:$16 sps:$4 sm:$0xff]   ;;  %v3648_v41 = vld [vmem:[#allocation5 + $0x4e8] ss:$16 sps:$4 sm:$0xff]  }
  0xad   :  { %1356 = vmatprep.subr.bf16.mxu0 %v3563_v42  ;;  %1520 = vmatprep.subr.bf16.mxu1 %v3566_v43  ;;  %v3653_v42 = vld [vmem:[#allocation5 + $0x504] ss:$16 sps:$4 sm:$0xff]   ;;  %v3656_v43 = vld [vmem:[#allocation5 + $0x50c] ss:$16 sps:$4 sm:$0xff]  }
  0xb0   :  { %1357 = vmatpush1.bf16.msra.mxu0 %v3561_v44  ;;  %1521 = vmatpush1.bf16.msra.mxu1 %v3564_v45  ;;  %v3651_v44 = vld [vmem:[#allocation5 + $0x500] ss:$16 sps:$4 sm:$0xff]   ;;  %v3654_v45 = vld [vmem:[#allocation5 + $0x508] ss:$16 sps:$4 sm:$0xff]  }
  0xb1   :  { %1358 = vmatprep.subr.bf16.mxu0 %v3569_v46  ;;  %1522 = vmatprep.subr.bf16.mxu1 %v3572_v47  ;;  %v3659_v46 = vld [vmem:[#allocation5 + $0x524] ss:$16 sps:$4 sm:$0xff]   ;;  %v3662_v47 = vld [vmem:[#allocation5 + $0x52c] ss:$16 sps:$4 sm:$0xff]  }
  0xb4   :  { %1359 = vmatpush1.bf16.msra.mxu0 %v3567_v48  ;;  %1523 = vmatpush1.bf16.msra.mxu1 %v3570_v49  ;;  %v3657_v48 = vld [vmem:[#allocation5 + $0x520] ss:$16 sps:$4 sm:$0xff]   ;;  %v3660_v49 = vld [vmem:[#allocation5 + $0x528] ss:$16 sps:$4 sm:$0xff]  }
  0xb5   :  { %1360 = vmatprep.subr.bf16.mxu0 %v3575_v50  ;;  %1524 = vmatprep.subr.bf16.mxu1 %v3578_v51  ;;  %v3665_v50 = vld [vmem:[#allocation5 + $0x544] ss:$16 sps:$4 sm:$0xff]   ;;  %v3668_v51 = vld [vmem:[#allocation5 + $0x54c] ss:$16 sps:$4 sm:$0xff]  }
  0xb8   :  { %1361 = vmatpush1.bf16.msra.mxu0 %v3573_v52  ;;  %1525 = vmatpush1.bf16.msra.mxu1 %v3576_v53  ;;  %v3663_v52 = vld [vmem:[#allocation5 + $0x540] ss:$16 sps:$4 sm:$0xff]   ;;  %v3666_v53 = vld [vmem:[#allocation5 + $0x548] ss:$16 sps:$4 sm:$0xff]  }
  0xb9   :  { %1362 = vmatprep.subr.bf16.mxu0 %v3581_v54  ;;  %1526 = vmatprep.subr.bf16.mxu1 %v3584_v55  ;;  %v3671_v54 = vld [vmem:[#allocation5 + $0x564] ss:$16 sps:$4 sm:$0xff]   ;;  %v3674_v55 = vld [vmem:[#allocation5 + $0x56c] ss:$16 sps:$4 sm:$0xff]  }
  0xbc   :  { %1363 = vmatpush1.bf16.msra.mxu0 %v3579_v56  ;;  %1527 = vmatpush1.bf16.msra.mxu1 %v3582_v57  ;;  %v3669_v56 = vld [vmem:[#allocation5 + $0x560] ss:$16 sps:$4 sm:$0xff]   ;;  %v3672_v57 = vld [vmem:[#allocation5 + $0x568] ss:$16 sps:$4 sm:$0xff]  }
  0xbd   :  { %1364 = vmatprep.subr.bf16.mxu0 %v3587_v58  ;;  %1528 = vmatprep.subr.bf16.mxu1 %v3590_v59  ;;  %v3677_v58 = vld [vmem:[#allocation5 + $0x584] ss:$16 sps:$4 sm:$0xff]   ;;  %v3680_v59 = vld [vmem:[#allocation5 + $0x58c] ss:$16 sps:$4 sm:$0xff]  }
  0xc0   :  { %1365 = vmatpush1.bf16.msra.mxu0 %v3585_v60  ;;  %1529 = vmatpush1.bf16.msra.mxu1 %v3588_v61  ;;  %v3675_v60 = vld [vmem:[#allocation5 + $0x580] ss:$16 sps:$4 sm:$0xff]   ;;  %v3678_v61 = vld [vmem:[#allocation5 + $0x588] ss:$16 sps:$4 sm:$0xff]  }
  0xc1   :  { %1366 = vmatprep.subr.bf16.mxu0 %v3593_v62  ;;  %1530 = vmatprep.subr.bf16.mxu1 %v3596_v63  ;;  %v3683_v62 = vld [vmem:[#allocation5 + $0x5a4] ss:$16 sps:$4 sm:$0xff]   ;;  %v3686_v63 = vld [vmem:[#allocation5 + $0x5ac] ss:$16 sps:$4 sm:$0xff]  }
  0xc4   :  { %1367 = vmatpush1.bf16.msra.mxu0 %v3591_v0  ;;  %1531 = vmatpush1.bf16.msra.mxu1 %v3594_v1  ;;  %v3681_v0 = vld [vmem:[#allocation5 + $0x5a0] ss:$16 sps:$4 sm:$0xff]   ;;  %v3684_v1 = vld [vmem:[#allocation5 + $0x5a8] ss:$16 sps:$4 sm:$0xff]  }
  0xc5   :  { %1368 = vmatprep.subr.bf16.mxu0 %v3599_v2  ;;  %1532 = vmatprep.subr.bf16.mxu1 %v3602_v3  ;;  %v3689_v2 = vld [vmem:[#allocation5 + $0x5c4] ss:$16 sps:$4 sm:$0xff]   ;;  %v3692_v3 = vld [vmem:[#allocation5 + $0x5cc] ss:$16 sps:$4 sm:$0xff]  }
  0xc8   :  { %1369 = vmatpush1.bf16.msra.mxu0 %v3597_v4  ;;  %1533 = vmatpush1.bf16.msra.mxu1 %v3600_v5  ;;  %v3687_v4 = vld [vmem:[#allocation5 + $0x5c0] ss:$16 sps:$4 sm:$0xff]   ;;  %v3690_v5 = vld [vmem:[#allocation5 + $0x5c8] ss:$16 sps:$4 sm:$0xff]  }
  0xc9   :  { %1379 = vmatprep.subr.bf16.mxu0 %v3605_v6  ;;  %1543 = vmatprep.subr.bf16.mxu1 %v3608_v8  ;;  %v3695_v6 = vld [vmem:[#allocation5 + $0x5e4] ss:$16 sps:$4 sm:$0xff]   ;;  %v3693_v8 = vld [vmem:[#allocation5 + $0x5e0] ss:$16 sps:$4 sm:$0xff]  }
  0xcb   :  { %1371 = vmatmul.mubr.bf16.vlgmr.msra.gmra.mrb[0].mxu0 %v90_v10  ;;  %1535 = vmatmul.mubr.bf16.vlgmr.msra.gmra.mrb[0].mxu1 %v90_v10  ;;  %v85_v10 = vld [vmem:[#allocation2 + $0x20] sm:$0xff] }
  0xcc   :  { %1380 = vmatpush1.bf16.msra.mxu0 %v3603_v9  ;;  %1544 = vmatpush1.bf16.msra.mxu1 %v3606_v11  ;;  %v3696_v9 = vld [vmem:[#allocation5 + $0x5e8] ss:$16 sps:$4 sm:$0xff]   ;;  %v3701_v11 = vld [vmem:[#allocation5 + $0x604] ss:$16 sps:$4 sm:$0xff]  }
  0xcd   :  { %1381 = vmatprep.subr.bf16.mxu0 %v3611_v12  ;;  %1545 = vmatprep.subr.bf16.mxu1 %v3614_v13  ;;  %v3704_v12 = vld [vmem:[#allocation5 + $0x60c] ss:$16 sps:$4 sm:$0xff]   ;;  %v3699_v13 = vld [vmem:[#allocation5 + $0x600] ss:$16 sps:$4 sm:$0xff]  }
  0xce   :  { %1411 = vmatprep.mubr.bf16.mxu0 %v93_v15  ;;  %1575 = vmatprep.mubr.bf16.mxu1 %v93_v15  ;;  %v92_v15 = vpack.c.bf16 %v85_v10, %v85_v10  ;;  %v3786_v10 = vld [vmem:[#allocation7 + $0x1a8] ss:$16 sps:$4 sm:$0xff]  }
  0xd0   :  { %1382 = vmatpush1.bf16.msra.mxu0 %v3609_v16  ;;  %1546 = vmatpush1.bf16.msra.mxu1 %v3612_v17  ;;  %v3707_v16 = vld [vmem:[#allocation7 + $0x4] ss:$16 sps:$4 sm:$0xff]   ;;  %v3710_v17 = vld [vmem:[#allocation7 + $0xc] ss:$16 sps:$4 sm:$0xff]  }
  0xd1   :  { %1383 = vmatprep.subr.bf16.mxu0 %v3617_v18  ;;  %1547 = vmatprep.subr.bf16.mxu1 %v3620_v19  ;;  %v4055_v18 = vmov 0   ;;  %v87_v19 = vld [vmem:[#allocation2 + $0x30] sm:$0xff] }
  0xd4   :  { %1384 = vmatpush1.bf16.msra.mxu0 %v3615_v20  ;;  %1548 = vmatpush1.bf16.msra.mxu1 %v3618_v21  ;;  %v3705_v20 = vld [vmem:[#allocation7] ss:$16 sps:$4 sm:$0xff]   ;;  %v3708_v21 = vld [vmem:[#allocation7 + $0x8] ss:$16 sps:$4 sm:$0xff]  }
  0xd5   :  { %1385 = vmatprep.subr.bf16.mxu0 %v3623_v22  ;;  %1549 = vmatprep.subr.bf16.mxu1 %v3626_v23  ;;  %v94_v22 = vpack.c.bf16 %v87_v19, %v87_v19  ;;  %v3713_v23 = vld [vmem:[#allocation7 + $0x24] ss:$16 sps:$4 sm:$0xff]  }
  0xd6   :  { %v3803_v19 = vld [vmem:[#allocation7 + $0x204] ss:$16 sps:$4 sm:$0xff]  }
  0xd8   :  { %1386 = vmatpush1.bf16.msra.mxu0 %v3621_v24  ;;  %1550 = vmatpush1.bf16.msra.mxu1 %v3624_v25  ;;  %v3716_v24 = vld [vmem:[#allocation7 + $0x2c] ss:$16 sps:$4 sm:$0xff]   ;;  %v3711_v25 = vld [vmem:[#allocation7 + $0x20] ss:$16 sps:$4 sm:$0xff]  }
  0xd9   :  { %1387 = vmatprep.subr.bf16.mxu0 %v3629_v26  ;;  %1551 = vmatprep.subr.bf16.mxu1 %v3632_v27  ;;  %v3714_v26 = vld [vmem:[#allocation7 + $0x28] ss:$16 sps:$4 sm:$0xff]   ;;  %v3719_v27 = vld [vmem:[#allocation7 + $0x44] ss:$16 sps:$4 sm:$0xff]  }
  0xdc   :  { %1388 = vmatpush1.bf16.msra.mxu0 %v3627_v28  ;;  %1552 = vmatpush1.bf16.msra.mxu1 %v3630_v29  ;;  %v3722_v28 = vld [vmem:[#allocation7 + $0x4c] ss:$16 sps:$4 sm:$0xff]   ;;  %v3717_v29 = vld [vmem:[#allocation7 + $0x40] ss:$16 sps:$4 sm:$0xff]  }
  0xdd   :  { %1389 = vmatprep.subr.bf16.mxu0 %v3635_v30  ;;  %1553 = vmatprep.subr.bf16.mxu1 %v3638_v31  ;;  %v3720_v30 = vld [vmem:[#allocation7 + $0x48] ss:$16 sps:$4 sm:$0xff]   ;;  %v3725_v31 = vld [vmem:[#allocation7 + $0x64] ss:$16 sps:$4 sm:$0xff]  }
  0xe0   :  { %1390 = vmatpush1.bf16.msra.mxu0 %v3633_v32  ;;  %1554 = vmatpush1.bf16.msra.mxu1 %v3636_v33  ;;  %v3728_v32 = vld [vmem:[#allocation7 + $0x6c] ss:$16 sps:$4 sm:$0xff]   ;;  %v3723_v33 = vld [vmem:[#allocation7 + $0x60] ss:$16 sps:$4 sm:$0xff]  }
  0xe1   :  { %1391 = vmatprep.subr.bf16.mxu0 %v3641_v34  ;;  %1555 = vmatprep.subr.bf16.mxu1 %v3644_v35  ;;  %v3726_v34 = vld [vmem:[#allocation7 + $0x68] ss:$16 sps:$4 sm:$0xff]   ;;  %v3731_v35 = vld [vmem:[#allocation7 + $0x84] ss:$16 sps:$4 sm:$0xff]  }
  0xe4   :  { %1392 = vmatpush1.bf16.msra.mxu0 %v3639_v36  ;;  %1556 = vmatpush1.bf16.msra.mxu1 %v3642_v37  ;;  %v3734_v36 = vld [vmem:[#allocation7 + $0x8c] ss:$16 sps:$4 sm:$0xff]   ;;  %v3729_v37 = vld [vmem:[#allocation7 + $0x80] ss:$16 sps:$4 sm:$0xff]  }
  0xe5   :  { %1393 = vmatprep.subr.bf16.mxu0 %v3647_v38  ;;  %1557 = vmatprep.subr.bf16.mxu1 %v3650_v39  ;;  %v3732_v38 = vld [vmem:[#allocation7 + $0x88] ss:$16 sps:$4 sm:$0xff]   ;;  %v3737_v39 = vld [vmem:[#allocation7 + $0xa4] ss:$16 sps:$4 sm:$0xff]  }
  0xe8   :  { %1394 = vmatpush1.bf16.msra.mxu0 %v3645_v40  ;;  %1558 = vmatpush1.bf16.msra.mxu1 %v3648_v41  ;;  %v3740_v40 = vld [vmem:[#allocation7 + $0xac] ss:$16 sps:$4 sm:$0xff]   ;;  %v3735_v41 = vld [vmem:[#allocation7 + $0xa0] ss:$16 sps:$4 sm:$0xff]  }
  0xe9   :  { %1395 = vmatprep.subr.bf16.mxu0 %v3653_v42  ;;  %1559 = vmatprep.subr.bf16.mxu1 %v3656_v43  ;;  %v3738_v42 = vld [vmem:[#allocation7 + $0xa8] ss:$16 sps:$4 sm:$0xff]   ;;  %v3743_v43 = vld [vmem:[#allocation7 + $0xc4] ss:$16 sps:$4 sm:$0xff]  }
  0xec   :  { %1396 = vmatpush1.bf16.msra.mxu0 %v3651_v44  ;;  %1560 = vmatpush1.bf16.msra.mxu1 %v3654_v45  ;;  %v3746_v44 = vld [vmem:[#allocation7 + $0xcc] ss:$16 sps:$4 sm:$0xff]   ;;  %v3741_v45 = vld [vmem:[#allocation7 + $0xc0] ss:$16 sps:$4 sm:$0xff]  }
  0xed   :  { %1397 = vmatprep.subr.bf16.mxu0 %v3659_v46  ;;  %1561 = vmatprep.subr.bf16.mxu1 %v3662_v47  ;;  %v3744_v46 = vld [vmem:[#allocation7 + $0xc8] ss:$16 sps:$4 sm:$0xff]   ;;  %v3749_v47 = vld [vmem:[#allocation7 + $0xe4] ss:$16 sps:$4 sm:$0xff]  }
  0xf0   :  { %1398 = vmatpush1.bf16.msra.mxu0 %v3657_v48  ;;  %1562 = vmatpush1.bf16.msra.mxu1 %v3660_v49  ;;  %v3752_v48 = vld [vmem:[#allocation7 + $0xec] ss:$16 sps:$4 sm:$0xff]   ;;  %v3747_v49 = vld [vmem:[#allocation7 + $0xe0] ss:$16 sps:$4 sm:$0xff]  }
  0xf1   :  { %1399 = vmatprep.subr.bf16.mxu0 %v3665_v50  ;;  %1563 = vmatprep.subr.bf16.mxu1 %v3668_v51  ;;  %v3750_v50 = vld [vmem:[#allocation7 + $0xe8] ss:$16 sps:$4 sm:$0xff]   ;;  %v3755_v51 = vld [vmem:[#allocation7 + $0x104] ss:$16 sps:$4 sm:$0xff]  }
  0xf4   :  { %1400 = vmatpush1.bf16.msra.mxu0 %v3663_v52  ;;  %1564 = vmatpush1.bf16.msra.mxu1 %v3666_v53  ;;  %v3758_v52 = vld [vmem:[#allocation7 + $0x10c] ss:$16 sps:$4 sm:$0xff]   ;;  %v3753_v53 = vld [vmem:[#allocation7 + $0x100] ss:$16 sps:$4 sm:$0xff]  }
  0xf5   :  { %1401 = vmatprep.subr.bf16.mxu0 %v3671_v54  ;;  %1565 = vmatprep.subr.bf16.mxu1 %v3674_v55  ;;  %v3756_v54 = vld [vmem:[#allocation7 + $0x108] ss:$16 sps:$4 sm:$0xff]   ;;  %v3761_v55 = vld [vmem:[#allocation7 + $0x124] ss:$16 sps:$4 sm:$0xff]  }
  0xf8   :  { %1402 = vmatpush1.bf16.msra.mxu0 %v3669_v56  ;;  %1566 = vmatpush1.bf16.msra.mxu1 %v3672_v57  ;;  %v3764_v56 = vld [vmem:[#allocation7 + $0x12c] ss:$16 sps:$4 sm:$0xff]   ;;  %v3759_v57 = vld [vmem:[#allocation7 + $0x120] ss:$16 sps:$4 sm:$0xff]  }
  0xf9   :  { %1403 = vmatprep.subr.bf16.mxu0 %v3677_v58  ;;  %1567 = vmatprep.subr.bf16.mxu1 %v3680_v59  ;;  %v3762_v58 = vld [vmem:[#allocation7 + $0x128] ss:$16 sps:$4 sm:$0xff]   ;;  %v3767_v59 = vld [vmem:[#allocation7 + $0x144] ss:$16 sps:$4 sm:$0xff]  }
  0xfc   :  { %1404 = vmatpush1.bf16.msra.mxu0 %v3675_v60  ;;  %1568 = vmatpush1.bf16.msra.mxu1 %v3678_v61  ;;  %v3770_v60 = vld [vmem:[#allocation7 + $0x14c] ss:$16 sps:$4 sm:$0xff]   ;;  %v3765_v61 = vld [vmem:[#allocation7 + $0x140] ss:$16 sps:$4 sm:$0xff]  }
  0xfd   :  { %1405 = vmatprep.subr.bf16.mxu0 %v3683_v62  ;;  %1569 = vmatprep.subr.bf16.mxu1 %v3686_v63  ;;  %v3768_v62 = vld [vmem:[#allocation7 + $0x148] ss:$16 sps:$4 sm:$0xff]   ;;  %v3773_v63 = vld [vmem:[#allocation7 + $0x164] ss:$16 sps:$4 sm:$0xff]  }
 0x100   :  { %1406 = vmatpush1.bf16.msra.mxu0 %v3681_v0  ;;  %1570 = vmatpush1.bf16.msra.mxu1 %v3684_v1  ;;  %v3776_v0 = vld [vmem:[#allocation7 + $0x16c] ss:$16 sps:$4 sm:$0xff]   ;;  %v3771_v1 = vld [vmem:[#allocation7 + $0x160] ss:$16 sps:$4 sm:$0xff]  }
 0x101   :  { %1407 = vmatprep.subr.bf16.mxu0 %v3689_v2  ;;  %1571 = vmatprep.subr.bf16.mxu1 %v3692_v3  ;;  %v3774_v2 = vld [vmem:[#allocation7 + $0x168] ss:$16 sps:$4 sm:$0xff]   ;;  %v3779_v3 = vld [vmem:[#allocation7 + $0x184] ss:$16 sps:$4 sm:$0xff]  }
 0x104   :  { %1408 = vmatpush1.bf16.msra.mxu0 %v3687_v4  ;;  %1572 = vmatpush1.bf16.msra.mxu1 %v3690_v5  ;;  %v3782_v4 = vld [vmem:[#allocation7 + $0x18c] ss:$16 sps:$4 sm:$0xff]   ;;  %v3777_v5 = vld [vmem:[#allocation7 + $0x180] ss:$16 sps:$4 sm:$0xff]  }
 0x105   :  { %1409 = vmatprep.subr.bf16.mxu0 %v3695_v6  ;;  %1573 = vmatprep.subr.bf16.mxu1 %v3698_v7  ;;  %v3780_v6 = vld [vmem:[#allocation7 + $0x188] ss:$16 sps:$4 sm:$0xff]   ;;  %v3785_v7 = vld [vmem:[#allocation7 + $0x1a4] ss:$16 sps:$4 sm:$0xff]  }
 0x108   :  { %1410 = vmatpush1.bf16.msra.mxu0 %v3693_v8  ;;  %1574 = vmatpush1.bf16.msra.mxu1 %v3696_v9  ;;  %v3788_v8 = vld [vmem:[#allocation7 + $0x1ac] ss:$16 sps:$4 sm:$0xff]   ;;  %v3783_v9 = vld [vmem:[#allocation7 + $0x1a0] ss:$16 sps:$4 sm:$0xff]  }
 0x109   :  { %1420 = vmatprep.subr.bf16.mxu0 %v3701_v11  ;;  %1584 = vmatprep.subr.bf16.mxu1 %v3704_v12  ;;  %v3791_v11 = vld [vmem:[#allocation7 + $0x1c4] ss:$16 sps:$4 sm:$0xff]   ;;  %v3794_v12 = vld [vmem:[#allocation7 + $0x1cc] ss:$16 sps:$4 sm:$0xff]  }
 0x10b   :  { %1412 = vmatmul.mubr.bf16.vlgmr.msra.gmra.mrb[0].mxu0 %v92_v15  ;;  %1576 = vmatmul.mubr.bf16.vlgmr.msra.gmra.mrb[0].mxu1 %v92_v15  ;;  %v3797_v15 = vld [vmem:[#allocation7 + $0x1e4] ss:$16 sps:$4 sm:$0xff]  }
 0x10c   :  { %1421 = vmatpush1.bf16.msra.mxu0 %v3699_v13  ;;  %1585 = vmatpush1.bf16.msra.mxu1 %v3702_v14  ;;  %v3789_v13 = vld [vmem:[#allocation7 + $0x1c0] ss:$16 sps:$4 sm:$0xff]   ;;  %v3792_v14 = vld [vmem:[#allocation7 + $0x1c8] ss:$16 sps:$4 sm:$0xff]  }
 0x10d   :  { %1452 = vmatprep.mubr.bf16.mxu0 %v4055_v18  ;;  %1616 = vmatprep.mubr.bf16.mxu1 %v4055_v18  ;;  %v3798_v18 = vld [vmem:[#allocation7 + $0x1e8] ss:$16 sps:$4 sm:$0xff]  }
 0x10e   :  { %2423 = vmatprep.subr.bf16.mxu0 %v3707_v16  ;;  %2505 = vmatprep.subr.bf16.mxu1 %v3710_v17  ;;  %v3800_v16 = vld [vmem:[#allocation7 + $0x1ec] ss:$16 sps:$4 sm:$0xff]   ;;  %v3795_v17 = vld [vmem:[#allocation7 + $0x1e0] ss:$16 sps:$4 sm:$0xff]  }
 0x117   :  { %3154 = vmatmul.mubr.msk.bf16.vlgmr.msra.gmra.mrb[0].mxu0 %vm1293_vm0, %v94_v22  ;;  %3155 = vmatmul.mubr.msk.bf16.vlgmr.msra.gmra.mrb[0].mxu1 %vm1293_vm0, %v94_v22 }
 0x118   :  { %2424 = vmatpush1.bf16.msra.mxu0 %v3705_v20  ;;  %2506 = vmatpush1.bf16.msra.mxu1 %v3708_v21  ;;  %v3806_v20 = vld [vmem:[#allocation7 + $0x20c] ss:$16 sps:$4 sm:$0xff]   ;;  %v293_v21 = vlaneseq }
 0x119   :  { %2425 = vmatprep.subr.bf16.mxu0 %v3713_v23  ;;  %2507 = vmatprep.subr.bf16.mxu1 %v3716_v24  ;;  %v4157_v24 = vld [vmem:[%s4205_s2] sm:$0xf] }
 0x11a   :  { %v4151_v22 = vshrl.u32 %v293_v21, 7  ;;  %v3863_v21 = vld [vmem:[#allocation7 + $0x344] ss:$16 sps:$4 sm:$0xff]  }
 0x11c   :  { %2426 = vmatpush1.bf16.msra.mxu0 %v3711_v25  ;;  %2508 = vmatpush1.bf16.msra.mxu1 %v3714_v26  ;;  %v295_v23 = vsub.s32 0, %v4151_v22  ;;  %v299_v25 = vsub.s32 1, %v4151_v22  ;;  %v307_v26 = vsub.s32 3, %v4151_v22 }
 0x11d   :  { %2427 = vmatprep.subr.bf16.mxu0 %v3719_v27  ;;  %2509 = vmatprep.subr.bf16.mxu1 %v3722_v28 }
 0x11e   :  { %v296_v27 = vrot.slane %v4157_v24, %v295_v23  ;;  %v300_v28 = vrot.slane %v4157_v24, %v299_v25 }
 0x120   :  { %2428 = vmatpush1.bf16.msra.mxu0 %v3717_v29  ;;  %2510 = vmatpush1.bf16.msra.mxu1 %v3720_v30  ;;  %v308_v29 = vrot.slane %v4157_v24, %v307_v26 }
 0x121   :  { %2429 = vmatprep.subr.bf16.mxu0 %v3725_v31  ;;  %2511 = vmatprep.subr.bf16.mxu1 %v3728_v32 }
 0x124   :  { %2430 = vmatpush1.bf16.msra.mxu0 %v3723_v33  ;;  %2512 = vmatpush1.bf16.msra.mxu1 %v3726_v34 }
 0x125   :  { %2431 = vmatprep.subr.bf16.mxu0 %v3731_v35  ;;  %2513 = vmatprep.subr.bf16.mxu1 %v3734_v36 }
 0x128   :  { %2432 = vmatpush1.bf16.msra.mxu0 %v3729_v37  ;;  %2514 = vmatpush1.bf16.msra.mxu1 %v3732_v38 }
 0x129   :  { %2433 = vmatprep.subr.bf16.mxu0 %v3737_v39  ;;  %2515 = vmatprep.subr.bf16.mxu1 %v3740_v40 }
 0x12c   :  { %2434 = vmatpush1.bf16.msra.mxu0 %v3735_v41  ;;  %2516 = vmatpush1.bf16.msra.mxu1 %v3738_v42 }
 0x12d   :  { %2435 = vmatprep.subr.bf16.mxu0 %v3743_v43  ;;  %2517 = vmatprep.subr.bf16.mxu1 %v3746_v44 }
 0x130   :  { %2436 = vmatpush1.bf16.msra.mxu0 %v3741_v45  ;;  %2518 = vmatpush1.bf16.msra.mxu1 %v3744_v46  ;;  %v3801_v45 = vld [vmem:[#allocation7 + $0x200] ss:$16 sps:$4 sm:$0xff]   ;;  %v3804_v46 = vld [vmem:[#allocation7 + $0x208] ss:$16 sps:$4 sm:$0xff]  }
 0x131   :  { %2437 = vmatprep.subr.bf16.mxu0 %v3749_v47  ;;  %2519 = vmatprep.subr.bf16.mxu1 %v3752_v48  ;;  %v3809_v48 = vld [vmem:[#allocation7 + $0x224] ss:$16 sps:$4 sm:$0xff]  }
 0x134   :  { %2438 = vmatpush1.bf16.msra.mxu0 %v3747_v49  ;;  %2520 = vmatpush1.bf16.msra.mxu1 %v3750_v50  ;;  %v3812_v49 = vld [vmem:[#allocation7 + $0x22c] ss:$16 sps:$4 sm:$0xff]  }
 0x135   :  { %2439 = vmatprep.subr.bf16.mxu0 %v3755_v51  ;;  %2521 = vmatprep.subr.bf16.mxu1 %v3758_v52  ;;  %v3807_v51 = vld [vmem:[#allocation7 + $0x220] ss:$16 sps:$4 sm:$0xff]   ;;  %v3810_v52 = vld [vmem:[#allocation7 + $0x228] ss:$16 sps:$4 sm:$0xff]  }
 0x138   :  { %2440 = vmatpush1.bf16.msra.mxu0 %v3753_v53  ;;  %2522 = vmatpush1.bf16.msra.mxu1 %v3756_v54  ;;  %v3815_v53 = vld [vmem:[#allocation7 + $0x244] ss:$16 sps:$4 sm:$0xff]   ;;  %v3818_v54 = vld [vmem:[#allocation7 + $0x24c] ss:$16 sps:$4 sm:$0xff]  }
 0x139   :  { %2441 = vmatprep.subr.bf16.mxu0 %v3761_v55  ;;  %2523 = vmatprep.subr.bf16.mxu1 %v3764_v56  ;;  %v3813_v55 = vld [vmem:[#allocation7 + $0x240] ss:$16 sps:$4 sm:$0xff]   ;;  %v3816_v56 = vld [vmem:[#allocation7 + $0x248] ss:$16 sps:$4 sm:$0xff]  }
 0x13c   :  { %2442 = vmatpush1.bf16.msra.mxu0 %v3759_v57  ;;  %2524 = vmatpush1.bf16.msra.mxu1 %v3762_v58  ;;  %v3821_v57 = vld [vmem:[#allocation7 + $0x264] ss:$16 sps:$4 sm:$0xff]   ;;  %v3824_v58 = vld [vmem:[#allocation7 + $0x26c] ss:$16 sps:$4 sm:$0xff]  }
 0x13d   :  { %2443 = vmatprep.subr.bf16.mxu0 %v3767_v59  ;;  %2525 = vmatprep.subr.bf16.mxu1 %v3770_v60  ;;  %v3819_v59 = vld [vmem:[#allocation7 + $0x260] ss:$16 sps:$4 sm:$0xff]   ;;  %v3822_v60 = vld [vmem:[#allocation7 + $0x268] ss:$16 sps:$4 sm:$0xff]  }
 0x140   :  { %2444 = vmatpush1.bf16.msra.mxu0 %v3765_v61  ;;  %2526 = vmatpush1.bf16.msra.mxu1 %v3768_v62  ;;  %v3827_v61 = vld [vmem:[#allocation7 + $0x284] ss:$16 sps:$4 sm:$0xff]   ;;  %v3830_v62 = vld [vmem:[#allocation7 + $0x28c] ss:$16 sps:$4 sm:$0xff]  }
 0x141   :  { %2445 = vmatprep.subr.bf16.mxu0 %v3773_v63  ;;  %2527 = vmatprep.subr.bf16.mxu1 %v3776_v0  ;;  %v3825_v63 = vld [vmem:[#allocation7 + $0x280] ss:$16 sps:$4 sm:$0xff]   ;;  %v3828_v0 = vld [vmem:[#allocation7 + $0x288] ss:$16 sps:$4 sm:$0xff]  }
 0x144   :  { %2446 = vmatpush1.bf16.msra.mxu0 %v3771_v1  ;;  %2528 = vmatpush1.bf16.msra.mxu1 %v3774_v2  ;;  %v3833_v1 = vld [vmem:[#allocation7 + $0x2a4] ss:$16 sps:$4 sm:$0xff]   ;;  %v3836_v2 = vld [vmem:[#allocation7 + $0x2ac] ss:$16 sps:$4 sm:$0xff]  }
 0x145   :  { %2447 = vmatprep.subr.bf16.mxu0 %v3779_v3  ;;  %2529 = vmatprep.subr.bf16.mxu1 %v3782_v4  ;;  %v3831_v3 = vld [vmem:[#allocation7 + $0x2a0] ss:$16 sps:$4 sm:$0xff]   ;;  %v3834_v4 = vld [vmem:[#allocation7 + $0x2a8] ss:$16 sps:$4 sm:$0xff]  }
 0x148   :  { %2448 = vmatpush1.bf16.msra.mxu0 %v3777_v5  ;;  %2530 = vmatpush1.bf16.msra.mxu1 %v3780_v6  ;;  %v3839_v5 = vld [vmem:[#allocation7 + $0x2c4] ss:$16 sps:$4 sm:$0xff]   ;;  %v3842_v6 = vld [vmem:[#allocation7 + $0x2cc] ss:$16 sps:$4 sm:$0xff]  }
 0x149   :  { %2449 = vmatprep.subr.bf16.mxu0 %v3785_v7  ;;  %2531 = vmatprep.subr.bf16.mxu1 %v3788_v8  ;;  %v3837_v7 = vld [vmem:[#allocation7 + $0x2c0] ss:$16 sps:$4 sm:$0xff]   ;;  %v3840_v8 = vld [vmem:[#allocation7 + $0x2c8] ss:$16 sps:$4 sm:$0xff]  }
 0x14c   :  { %2450 = vmatpush1.bf16.msra.mxu0 %v3783_v9  ;;  %2532 = vmatpush1.bf16.msra.mxu1 %v3786_v10  ;;  %v3845_v9 = vld [vmem:[#allocation7 + $0x2e4] ss:$16 sps:$4 sm:$0xff]   ;;  %v3848_v10 = vld [vmem:[#allocation7 + $0x2ec] ss:$16 sps:$4 sm:$0xff]  }
 0x14d   :  { %2451 = vmatprep.subr.bf16.mxu0 %v3791_v11  ;;  %2533 = vmatprep.subr.bf16.mxu1 %v3794_v12  ;;  %v3843_v11 = vld [vmem:[#allocation7 + $0x2e0] ss:$16 sps:$4 sm:$0xff]   ;;  %v3846_v12 = vld [vmem:[#allocation7 + $0x2e8] ss:$16 sps:$4 sm:$0xff]  }
 0x150   :  { %2452 = vmatpush1.bf16.msra.mxu0 %v3789_v13  ;;  %2534 = vmatpush1.bf16.msra.mxu1 %v3792_v14  ;;  %v3851_v13 = vld [vmem:[#allocation7 + $0x304] ss:$16 sps:$4 sm:$0xff]   ;;  %v3854_v14 = vld [vmem:[#allocation7 + $0x30c] ss:$16 sps:$4 sm:$0xff]  }
 0x151   :  { %2453 = vmatprep.subr.bf16.mxu0 %v3797_v15  ;;  %2535 = vmatprep.subr.bf16.mxu1 %v3800_v16  ;;  %v3849_v15 = vld [vmem:[#allocation7 + $0x300] ss:$16 sps:$4 sm:$0xff]   ;;  %v3852_v16 = vld [vmem:[#allocation7 + $0x308] ss:$16 sps:$4 sm:$0xff]  }
 0x154   :  { %2454 = vmatpush1.bf16.msra.mxu0 %v3795_v17  ;;  %2536 = vmatpush1.bf16.msra.mxu1 %v3798_v18  ;;  %v3857_v17 = vld [vmem:[#allocation7 + $0x324] ss:$16 sps:$4 sm:$0xff]   ;;  %v3860_v18 = vld [vmem:[#allocation7 + $0x32c] ss:$16 sps:$4 sm:$0xff]  }
 0x155   :  { %2464 = vmatprep.subr.bf16.mxu0 %v3803_v19  ;;  %2546 = vmatprep.subr.bf16.mxu1 %v3806_v20  ;;  %v3855_v19 = vld [vmem:[#allocation7 + $0x320] ss:$16 sps:$4 sm:$0xff]   ;;  %v3858_v20 = vld [vmem:[#allocation7 + $0x328] ss:$16 sps:$4 sm:$0xff]  }
 0x1ea   :  { %v1454_v30 = vpop.f32.mrb[0].mxu0  ;;  %v4170_v31 = vpop.f32.mrb[0].mxu1 }
 0x1eb   :  { %v3361_v32 = vadd.f32 %v1454_v30, %v296_v27  ;;  %v1456_v33 = vpop.f32.mrb[1].mxu0  ;;  %v1620_v34 = vpop.f32.mrb[1].mxu1  ;;  %v3866_v27 = vld [vmem:[#allocation7 + $0x34c] ss:$16 sps:$4 sm:$0xff]   ;;  %v3869_v30 = vld [vmem:[#allocation7 + $0x364] ss:$16 sps:$4 sm:$0xff]  }
 0x1ec   :  { %v3362_v35 = vadd.f32 %v1456_v33, %v300_v28  ;;  %v3364_v36 = vadd.f32 %v1620_v34, %v308_v29  ;;  %v1458_v37 = vpop.f32.mrb[2].mxu0  ;;  %v1622_v38 = vpop.f32.mrb[2].mxu1  ;;  %v3861_v28 = vld [vmem:[#allocation7 + $0x340] ss:$16 sps:$4 sm:$0xff]   ;;  %v3864_v29 = vld [vmem:[#allocation7 + $0x348] ss:$16 sps:$4 sm:$0xff]  }
 0x1ed   :  { %v1625_v39 = vmax.f32 %v3361_v32, 0.0  ;;  %v1459_v40 = vpop.f32.mrb[3].mxu0  ;;  %v1623_v41 = vpop.f32.mrb[3].mxu1  ;;  %v3872_v32 = vld [vmem:[#allocation7 + $0x36c] ss:$16 sps:$4 sm:$0xff]  }
 0x1ee   :  { %v1626_v42 = vmax.f32 %v3362_v35, 0.0  ;;  %v1628_v43 = vmax.f32 %v3364_v36, 0.0  ;;  %v3867_v33 = vld [vmem:[#allocation7 + $0x360] ss:$16 sps:$4 sm:$0xff]   ;;  %v3870_v34 = vld [vmem:[#allocation7 + $0x368] ss:$16 sps:$4 sm:$0xff]  }
 0x1ef   :  { %v1629_v47 = vpack.c.bf16 %v1625_v39, %v1625_v39  ;;  %v3875_v35 = vld [vmem:[#allocation7 + $0x384] ss:$16 sps:$4 sm:$0xff]   ;;  %v3878_v36 = vld [vmem:[#allocation7 + $0x38c] ss:$16 sps:$4 sm:$0xff]   ;;  %v3873_v37 = vld [vmem:[#allocation7 + $0x380] ss:$16 sps:$4 sm:$0xff]  }
 0x1f0   :  { %v1630_v44 = vpack.c.bf16 %v1626_v42, %v1626_v42  ;;  %v1632_v50 = vpack.c.bf16 %v1628_v43, %v1628_v43  ;;  %v3876_v38 = vld [vmem:[#allocation7 + $0x388] ss:$16 sps:$4 sm:$0xff]   ;;  %v303_v39 = vsub.s32 2, %v4151_v22  ;;  %v3881_v40 = vld [vmem:[#allocation7 + $0x3a4] ss:$16 sps:$4 sm:$0xff]  }
 0x1f1   :  { %v3884_v41 = vld [vmem:[#allocation7 + $0x3ac] ss:$16 sps:$4 sm:$0xff]   ;;  %v3879_v42 = vld [vmem:[#allocation7 + $0x3a0] ss:$16 sps:$4 sm:$0xff]   ;;  %v3882_v43 = vld [vmem:[#allocation7 + $0x3a8] ss:$16 sps:$4 sm:$0xff]  }
 0x1f2   :  { %2455 = vmatprep.mubr.bf16.mxu0 %v1630_v44  ;;  %2537 = vmatprep.mubr.bf16.mxu1 %v1630_v44  ;;  %v304_v44 = vrot.slane %v4157_v24, %v303_v39  ;;  %v3897_v24 = vld [vmem:[#allocation8 + $0x40] sm:$0xff]  }
 0x1f3   :  { %2456 = vmatmul.mubr.bf16.vlgmr.msra.gmra.mrb[4].mxu0 %v1629_v47  ;;  %2538 = vmatmul.mubr.bf16.vlgmr.msra.gmra.mrb[4].mxu1 %v1629_v47  ;;  %v3885_v47 = vld [vmem:[#allocation7 + $0x3c0] ss:$16 sps:$4 sm:$0xff]  }
 0x1f4   :  { %2465 = vmatpush1.bf16.msra.mxu0 %v3801_v45  ;;  %2547 = vmatpush1.bf16.msra.mxu1 %v3804_v46  ;;  %v3887_v45 = vld [vmem:[#allocation7 + $0x3c4] ss:$16 sps:$4 sm:$0xff]   ;;  %v3890_v46 = vld [vmem:[#allocation7 + $0x3cc] ss:$16 sps:$4 sm:$0xff]  }
 0x1f5   :  { %2496 = vmatprep.mubr.bf16.mxu0 %v1632_v50  ;;  %2578 = vmatprep.mubr.bf16.mxu1 %v1632_v50  ;;  %v3893_v50 = vld [vmem:[#allocation7 + $0x3e4] ss:$16 sps:$4 sm:$0xff]  }
 0x1f6   :  { %2466 = vmatprep.subr.bf16.mxu0 %v3809_v48  ;;  %2548 = vmatprep.subr.bf16.mxu1 %v3812_v49  ;;  %v3888_v48 = vld [vmem:[#allocation7 + $0x3c8] ss:$16 sps:$4 sm:$0xff]   ;;  %v3363_v49 = vadd.f32 %v4170_v31, %v304_v44 }
 0x1f7   :  { %v3901_v31 = vld [vmem:[#allocation8 + $0x48] sm:$0xff]  }
 0x1f8   :  { %2467 = vmatpush1.bf16.msra.mxu0 %v3807_v51  ;;  %2549 = vmatpush1.bf16.msra.mxu1 %v3810_v52  ;;  %v3896_v51 = vld [vmem:[#allocation7 + $0x3ec] ss:$16 sps:$4 sm:$0xff]   ;;  %v3891_v52 = vld [vmem:[#allocation7 + $0x3e0] ss:$16 sps:$4 sm:$0xff]  }
 0x1f9   :  { %2468 = vmatprep.subr.bf16.mxu0 %v3815_v53  ;;  %2550 = vmatprep.subr.bf16.mxu1 %v3818_v54  ;;  %v3894_v53 = vld [vmem:[#allocation7 + $0x3e8] ss:$16 sps:$4 sm:$0xff]   ;;  %v1627_v54 = vmax.f32 %v3363_v49, 0.0 }
 0x1fc   :  { %2469 = vmatpush1.bf16.msra.mxu0 %v3813_v55  ;;  %2551 = vmatpush1.bf16.msra.mxu1 %v3816_v56  ;;  %v3898_v55 = vld [vmem:[#allocation8 + $0xc0] sm:$0xff]  }
 0x1fd   :  { %2470 = vmatprep.subr.bf16.mxu0 %v3821_v57  ;;  %2552 = vmatprep.subr.bf16.mxu1 %v3824_v58  ;;  %v3899_v56 = vld [vmem:[#allocation8] sm:$0xff]   ;;  %v1631_v58 = vpack.c.bf16 %v1627_v54, %v1627_v54 }
 0x1fe   :  { %v3900_v57 = vld [vmem:[#allocation8 + $0x80] sm:$0xff]  }
 0x200   :  { %2471 = vmatpush1.bf16.msra.mxu0 %v3819_v59  ;;  %2553 = vmatpush1.bf16.msra.mxu1 %v3822_v60  ;;  %v3902_v59 = vld [vmem:[#allocation8 + $0xc8] sm:$0xff]  }
 0x201   :  { %2472 = vmatprep.subr.bf16.mxu0 %v3827_v61  ;;  %2554 = vmatprep.subr.bf16.mxu1 %v3830_v62  ;;  %v3903_v60 = vld [vmem:[#allocation8 + $0x8] sm:$0xff]   ;;  %v3905_v62 = vld [vmem:[#allocation8 + $0x50] sm:$0xff]  }
 0x202   :  { %v3904_v61 = vld [vmem:[#allocation8 + $0x88] sm:$0xff]  }
 0x204   :  { %2473 = vmatpush1.bf16.msra.mxu0 %v3825_v63  ;;  %2555 = vmatpush1.bf16.msra.mxu1 %v3828_v0  ;;  %v3906_v63 = vld [vmem:[#allocation8 + $0xd0] sm:$0xff]  }
 0x205   :  { %2474 = vmatprep.subr.bf16.mxu0 %v3833_v1  ;;  %2556 = vmatprep.subr.bf16.mxu1 %v3836_v2  ;;  %v3907_v0 = vld [vmem:[#allocation8 + $0x10] sm:$0xff]   ;;  %v3909_v2 = vld [vmem:[#allocation8 + $0x58] sm:$0xff]  }
 0x206   :  { %v3908_v1 = vld [vmem:[#allocation8 + $0x90] sm:$0xff]  }
 0x208   :  { %2475 = vmatpush1.bf16.msra.mxu0 %v3831_v3  ;;  %2557 = vmatpush1.bf16.msra.mxu1 %v3834_v4  ;;  %v3910_v3 = vld [vmem:[#allocation8 + $0xd8] sm:$0xff]  }
 0x209   :  { %2476 = vmatprep.subr.bf16.mxu0 %v3839_v5  ;;  %2558 = vmatprep.subr.bf16.mxu1 %v3842_v6  ;;  %v3911_v4 = vld [vmem:[#allocation8 + $0x18] sm:$0xff]   ;;  %v3913_v6 = vld [vmem:[#allocation8 + $0x60] sm:$0xff]  }
 0x20a   :  { %v3912_v5 = vld [vmem:[#allocation8 + $0x98] sm:$0xff]  }
 0x20c   :  { %2477 = vmatpush1.bf16.msra.mxu0 %v3837_v7  ;;  %2559 = vmatpush1.bf16.msra.mxu1 %v3840_v8  ;;  %v3914_v7 = vld [vmem:[#allocation8 + $0xe0] sm:$0xff]  }
 0x20d   :  { %2478 = vmatprep.subr.bf16.mxu0 %v3845_v9  ;;  %2560 = vmatprep.subr.bf16.mxu1 %v3848_v10  ;;  %v3915_v8 = vld [vmem:[#allocation8 + $0x20] sm:$0xff]   ;;  %v3917_v10 = vld [vmem:[#allocation8 + $0x68] sm:$0xff]  }
 0x20e   :  { %v3916_v9 = vld [vmem:[#allocation8 + $0xa0] sm:$0xff]  }
 0x210   :  { %2479 = vmatpush1.bf16.msra.mxu0 %v3843_v11  ;;  %2561 = vmatpush1.bf16.msra.mxu1 %v3846_v12  ;;  %v3918_v11 = vld [vmem:[#allocation8 + $0xe8] sm:$0xff]  }
 0x211   :  { %2480 = vmatprep.subr.bf16.mxu0 %v3851_v13  ;;  %2562 = vmatprep.subr.bf16.mxu1 %v3854_v14  ;;  %v3919_v12 = vld [vmem:[#allocation8 + $0x28] sm:$0xff]   ;;  %v3921_v14 = vld [vmem:[#allocation8 + $0x70] sm:$0xff]  }
 0x212   :  { %v3920_v13 = vld [vmem:[#allocation8 + $0xa8] sm:$0xff]  }
 0x214   :  { %2481 = vmatpush1.bf16.msra.mxu0 %v3849_v15  ;;  %2563 = vmatpush1.bf16.msra.mxu1 %v3852_v16  ;;  %v3922_v15 = vld [vmem:[#allocation8 + $0xf0] sm:$0xff]  }
 0x215   :  { %2482 = vmatprep.subr.bf16.mxu0 %v3857_v17  ;;  %2564 = vmatprep.subr.bf16.mxu1 %v3860_v18  ;;  %v3923_v16 = vld [vmem:[#allocation8 + $0x30] sm:$0xff]   ;;  %v3925_v18 = vld [vmem:[#allocation8 + $0x78] sm:$0xff]  }
 0x216   :  { %v3924_v17 = vld [vmem:[#allocation8 + $0xb0] sm:$0xff]  }
 0x218   :  { %2483 = vmatpush1.bf16.msra.mxu0 %v3855_v19  ;;  %2565 = vmatpush1.bf16.msra.mxu1 %v3858_v20  ;;  %v3926_v19 = vld [vmem:[#allocation8 + $0xf8] sm:$0xff]  }
 0x219   :  { %2484 = vmatprep.subr.bf16.mxu0 %v3863_v21  ;;  %2566 = vmatprep.subr.bf16.mxu1 %v3866_v27  ;;  %v3927_v20 = vld [vmem:[#allocation8 + $0x38] sm:$0xff]   ;;  %v1761_v27 = vld [vmem:[%s4207_s4] sm:$0xf] }
 0x21a   :  { %v3928_v21 = vld [vmem:[#allocation8 + $0xb8] sm:$0xff]  }
 0x21c   :  { %2485 = vmatpush1.bf16.msra.mxu0 %v3861_v28  ;;  %2567 = vmatpush1.bf16.msra.mxu1 %v3864_v29  ;;  %v1766_v28 = vrot.slane %v1761_v27, %v295_v23  ;;  %v1774_v29 = vrot.slane %v1761_v27, %v303_v39 }
 0x21d   :  { %2486 = vmatprep.subr.bf16.mxu0 %v3869_v30  ;;  %2568 = vmatprep.subr.bf16.mxu1 %v3872_v32  ;;  %v1770_v30 = vrot.slane %v1761_v27, %v299_v25  ;;  %v1778_v32 = vrot.slane %v1761_v27, %v307_v26 }
 0x220   :  { %2487 = vmatpush1.bf16.msra.mxu0 %v3867_v33  ;;  %2569 = vmatpush1.bf16.msra.mxu1 %v3870_v34 }
 0x221   :  { %2488 = vmatprep.subr.bf16.mxu0 %v3875_v35  ;;  %2570 = vmatprep.subr.bf16.mxu1 %v3878_v36 }
 0x224   :  { %2489 = vmatpush1.bf16.msra.mxu0 %v3873_v37  ;;  %2571 = vmatpush1.bf16.msra.mxu1 %v3876_v38 }
 0x225   :  { %2490 = vmatprep.subr.bf16.mxu0 %v3881_v40  ;;  %2572 = vmatprep.subr.bf16.mxu1 %v3884_v41 }
 0x228   :  { %2491 = vmatpush1.bf16.msra.mxu0 %v3879_v42  ;;  %2573 = vmatpush1.bf16.msra.mxu1 %v3882_v43 }
 0x229   :  { %2492 = vmatprep.subr.bf16.mxu0 %v3887_v45  ;;  %2574 = vmatprep.subr.bf16.mxu1 %v3890_v46 }
 0x22c   :  { %2493 = vmatpush1.bf16.msra.mxu0 %v3885_v47  ;;  %2575 = vmatpush1.bf16.msra.mxu1 %v3888_v48 }
 0x22d   :  { %2494 = vmatprep.subr.bf16.mxu0 %v3893_v50  ;;  %2576 = vmatprep.subr.bf16.mxu1 %v3896_v51  ;;  %v3284_v51 = vld [vmem:[%s4209_s6] ss:$0 sm:$0xff] }
 0x230   :  { %2495 = vmatpush1.bf16.msra.mxu0 %v3891_v52  ;;  %2577 = vmatpush1.bf16.msra.mxu1 %v3894_v53 }
 0x231   :  { %3317 = vmatprep.subr.bf16.mxu0 %v3897_v24  ;;  %3339 = vmatprep.subr.bf16.mxu1 %v3898_v55 }
 0x233   :  { %2497 = vmatmul.mubr.bf16.vlgmr.msra.gmra.mrb[4].mxu0 %v1631_v58  ;;  %2579 = vmatmul.mubr.bf16.vlgmr.msra.gmra.mrb[4].mxu1 %v1631_v58 }
 0x234   :  { %3318 = vmatpush3.bf16.msra.mxu0 %v3899_v56  ;;  %3340 = vmatpush3.bf16.msra.mxu1 %v3900_v57 }
 0x235   :  { %3319 = vmatprep.subr.bf16.mxu0 %v3901_v31  ;;  %3341 = vmatprep.subr.bf16.mxu1 %v3902_v59 }
 0x238   :  { %3320 = vmatpush3.bf16.msra.mxu0 %v3903_v60  ;;  %3342 = vmatpush3.bf16.msra.mxu1 %v3904_v61 }
 0x239   :  { %3321 = vmatprep.subr.bf16.mxu0 %v3905_v62  ;;  %3343 = vmatprep.subr.bf16.mxu1 %v3906_v63 }
 0x23c   :  { %3322 = vmatpush3.bf16.msra.mxu0 %v3907_v0  ;;  %3344 = vmatpush3.bf16.msra.mxu1 %v3908_v1 }
 0x23d   :  { %3323 = vmatprep.subr.bf16.mxu0 %v3909_v2  ;;  %3345 = vmatprep.subr.bf16.mxu1 %v3910_v3 }
 0x240   :  { %3324 = vmatpush3.bf16.msra.mxu0 %v3911_v4  ;;  %3346 = vmatpush3.bf16.msra.mxu1 %v3912_v5 }
 0x241   :  { %3325 = vmatprep.subr.bf16.mxu0 %v3913_v6  ;;  %3347 = vmatprep.subr.bf16.mxu1 %v3914_v7 }
 0x244   :  { %3326 = vmatpush3.bf16.msra.mxu0 %v3915_v8  ;;  %3348 = vmatpush3.bf16.msra.mxu1 %v3916_v9 }
 0x245   :  { %3327 = vmatprep.subr.bf16.mxu0 %v3917_v10  ;;  %3349 = vmatprep.subr.bf16.mxu1 %v3918_v11 }
 0x248   :  { %3328 = vmatpush3.bf16.msra.mxu0 %v3919_v12  ;;  %3350 = vmatpush3.bf16.msra.mxu1 %v3920_v13 }
 0x249   :  { %3329 = vmatprep.subr.bf16.mxu0 %v3921_v14  ;;  %3351 = vmatprep.subr.bf16.mxu1 %v3922_v15 }
 0x24c   :  { %3330 = vmatpush3.bf16.msra.mxu0 %v3923_v16  ;;  %3352 = vmatpush3.bf16.msra.mxu1 %v3924_v17 }
 0x24d   :  { %3331 = vmatprep.subr.bf16.mxu0 %v3925_v18  ;;  %3353 = vmatprep.subr.bf16.mxu1 %v3926_v19 }
 0x250   :  { %3332 = vmatpush3.bf16.msra.mxu0 %v3927_v20  ;;  %3354 = vmatpush3.bf16.msra.mxu1 %v3928_v21 }
 0x306   :  { %v2498_v33 = vpop.f32.mrb[4].mxu0  ;;  %v2580_v34 = vpop.f32.mrb[4].mxu1 }
 0x307   :  { %v3365_v35 = vadd.f32 %v2498_v33, %v1766_v28  ;;  %v3367_v36 = vadd.f32 %v2580_v34, %v1774_v29  ;;  %v2500_v37 = vpop.f32.mrb[5].mxu0  ;;  %v2582_v38 = vpop.f32.mrb[5].mxu1 }
 0x308   :  { %v3366_v40 = vadd.f32 %v2500_v37, %v1770_v30  ;;  %v3368_v41 = vadd.f32 %v2582_v38, %v1778_v32  ;;  %v2502_v42 = vpop.f32.mrb[6].mxu0  ;;  %v2584_v43 = vpop.f32.mrb[6].mxu1 }
 0x309   :  { %v2587_v23 = vmax.f32 %v3365_v35, 0.0  ;;  %v2589_v44 = vmax.f32 %v3367_v36, 0.0  ;;  %v2503_v45 = vpop.f32.mrb[7].mxu0  ;;  %v2585_v39 = vpop.f32.mrb[7].mxu1 }
 0x30a   :  { %v2588_v46 = vmax.f32 %v3366_v40, 0.0  ;;  %v2590_v47 = vmax.f32 %v3368_v41, 0.0 }
 0x30b   :  { %v2591_v22 = vpack.c.bf16 %v2587_v23, %v2587_v23  ;;  %v2593_v26 = vpack.c.bf16 %v2589_v44, %v2589_v44 }
 0x30c   :  { %v2592_v25 = vpack.c.bf16 %v2588_v46, %v2588_v46  ;;  %v2594_v48 = vpack.c.bf16 %v2590_v47, %v2590_v47 }
 0x30e   :  { %2890 = vmatprep.mubr.bf16.mxu0 %v2592_v25  ;;  %2930 = vmatprep.mubr.bf16.mxu1 %v2594_v48 }
 0x30f   :  { %2891 = vmatmul.mubr.bf16.vlgmr.msra.gmra.mrb[8].mxu0 %v2591_v22  ;;  %2931 = vmatmul.mubr.bf16.vlgmr.msra.gmra.mrb[8].mxu1 %v2593_v26 }
 0x3e2   :  { %v3333_v49 = vpop.f32.mrb[8].mxu0  ;;  %v3355_v50 = vpop.f32.mrb[8].mxu1 }
 0x3e3   :  { %v3334_v52 = vpop.f32.mrb[9].mxu0  ;;  %v3356_v53 = vpop.f32.mrb[9].mxu1 }
 0x3e4   :  { %v3335_v54 = vadd.f32 %v3334_v52, %v3333_v49  ;;  %v3357_v24 = vadd.f32 %v3356_v53, %v3355_v50  ;;  %v3336_v55 = vpop.f32.mrb[10].mxu0  ;;  %v3358_v56 = vpop.f32.mrb[10].mxu1 }
 0x3e5   :  { %v3337_v57 = vpop.f32.mrb[11].mxu0  ;;  %v3359_v58 = vpop.f32.mrb[11].mxu1 }
 0x3e6   :  { %v2893_v31 = vadd.f32 %v3335_v54, %v3284_v51 }
 0x3e8   :  { %v2933_v59 = vadd.f32 %v3357_v24, %v2893_v31 }
 0x3ea   :  { %v2938_v60 = vmax.f32 %v2933_v59, 0.0 }
 0x3ec   :  { %v2939_v61 = vpack.c.bf16 %v2938_v60, %v2938_v60 }
 0x3ee   :  { %2940 = vst [vmem:[#allocation10] sm:$0xf] %v2939_v61 }
 0x3ef   :  { %4028 = shalt.err (!%p4025_p8)
}
 0x3f0   :  { %s4029_s10 = scalar_lea.hbm %s4210_s7, 64 }
 0x3f1   :  { %p4030_p9 = scmp.ne.s32.totalorder %s4210_s7, %s4029_s10  ;;  %p4033_p10 = scmp.lt.u32.totalorder %s4029_s10, %s4210_s7 }
 0x3f3   :  { %p4035_p11 = pnand %p4033_p10, %p4030_p9 }
 0x3f5   :  { %4038 = shalt.err (!%p4035_p11)
}
 0x3f6   :  { %2950 = dma.vmem_to_hbm [thread:$0]  %s2948_s30, 64, %s4210_s7, [#allocation4]  }
 0x3f7   :  { %4045 = dma.done.wait [#allocation4], 64  }
 0x3f8   :  { %4046 = vsyncadd [#allocation4], 4294967232 }
 0x3f9   :  { %2954 = vsyncpa [#allocation3], 1 }
 0x3fa   :  { %2955 = vsyncpa [#allocation6], 1 }
 0x3fb   :  { %2956 = vsyncpa [#allocation9], 1 }
 0x3fc   :  { %2957 = vsyncpa [#allocation4], 1 }

</bundles_post_ra>
